<compile_context>
chip_gen: v5e
topology: v5e:2x2
jax: 0.10.0
libtpu: 0.0.40
codegen_flags: <defaults>
</compile_context>

<pallas_src>
import functools

import jax
import jax.numpy as jnp
from jax.experimental import pallas as pl
from jax.experimental.pallas import tpu as pltpu


def _basic_conv_kernel(x_ref, w_ref, shift_ref, o_ref, *scratch, Hout, Wout, KH, KW,
                       stride, dilation, groups, pad, apply_relu, fuse_taps):
    bt, H, W, cin = x_ref.shape
    cout = o_ref.shape[1]
    cin_g = cin // groups
    cout_g = cout // groups
    hw = Hout * Wout
    M = bt * hw
    ktot_g = KH * KW * cin_g

    # ---- zero-pad inside VMEM: halo strips only, no full-buffer memset ----------------
    if pad > 0:
        xp_ref = scratch[0]
        Hp, Wp = H + 2 * pad, W + 2 * pad
        zrow = jnp.zeros((bt, pad, Wp, cin), x_ref.dtype)
        xp_ref[:, :pad, :, :] = zrow
        xp_ref[:, pad + H:, :, :] = zrow
        zcol = jnp.zeros((bt, H, pad, cin), x_ref.dtype)
        xp_ref[:, pad:pad + H, :pad, :] = zcol
        xp_ref[:, pad:pad + H, pad + W:, :] = zcol
        xp_ref[:, pad:pad + H, pad:pad + W, :] = x_ref[...]
        src = xp_ref
    else:
        src = x_ref

    def window(h0, w0, c0):
        # (bt, Hout, Wout, cin_g) read straight from the (padded) ref window.
        if stride == 1:
            return src[:, pl.ds(h0, Hout), pl.ds(w0, Wout), c0:c0 + cin_g]
        return src[:, pl.ds(h0, Hout, stride), pl.ds(w0, Wout, stride), c0:c0 + cin_g]

    taps = [(kh, kw) for kh in range(KH) for kw in range(KW)]

    for g in range(groups):
        c0 = g * cin_g
        wg = w_ref[g * cout_g:(g + 1) * cout_g, :]        # (cout_g, KH*KW*cin_g), bf16

        if fuse_taps:
            # im2col-lite: K = KH*KW*cin_g in ONE MXU contraction per group.
            pieces = [window(kh * dilation, kw * dilation, c0) for kh, kw in taps]
            patch = pieces[0] if len(pieces) == 1 else jnp.concatenate(pieces, axis=-1)
            patch = patch.reshape(M, ktot_g).astype(jnp.bfloat16)
            # (cout_g, K) x (M, K) -> (cout_g, M); f32 accumulate (same NT form as QK^T).
            acc = jax.lax.dot_general(wg, patch, (((1,), (1,)), ((), ())),
                                      preferred_element_type=jnp.float32)
        else:
            # Large Cin/groups: each tap already has an MXU-deep K; skip the 9x patch copy.
            acc = jnp.zeros((cout_g, M), jnp.float32)
            for t, (kh, kw) in enumerate(taps):
                piece = window(kh * dilation, kw * dilation, c0)
                piece = piece.reshape(M, cin_g).astype(jnp.bfloat16)
                w_tap = wg[:, t * cin_g:(t + 1) * cin_g]
                acc = acc + jax.lax.dot_general(w_tap, piece, (((1,), (1,)), ((), ())),
                                                preferred_element_type=jnp.float32)

        # Fused epilogue in f32: conv bias + folded BatchNorm shift, then ReLU.
        acc = acc + shift_ref[g * cout_g:(g + 1) * cout_g, :]
        if apply_relu:
            acc = jnp.maximum(acc, 0.0)
        acc = acc.astype(o_ref.dtype)
        for b in range(bt):  # lane-dense stores: minor dim is Hout*Wout
            o_ref[b, g * cout_g:(g + 1) * cout_g, :] = acc[:, b * hw:(b + 1) * hw]


def _pick_batch_block(n, per_image_bytes, budget_bytes):
    """Largest batch block dividing n that fits the budget, preferring >=2 grid steps."""
    cands = [c for c in range(1, n + 1)
             if n % c == 0 and c * per_image_bytes <= budget_bytes]
    if not cands:
        return 1
    multi = [c for c in cands if n // c >= 2]   # keep both megacore TCs / the pipeline fed
    return max(multi) if multi else max(cands)


def basic_conv(x_nchw, weight_oihw, *, bias=None, stride=1, padding=0, dilation=1,
               groups=1, relu=True, bn=None, bn_eps=1e-5,
               vmem_budget_bytes=8 * 1024 * 1024):
    """Fused Conv2d(+bias)(+inference BN)(+ReLU); NCHW in / NCHW out (PyTorch layout)."""
    N, Cin, H, W = x_nchw.shape
    Cout, cin_g, KH, KW = weight_oihw.shape
    assert Cin == cin_g * groups and Cout % groups == 0

    Hout = (H + 2 * padding - dilation * (KH - 1) - 1) // stride + 1
    Wout = (W + 2 * padding - dilation * (KW - 1) - 1) // stride + 1
    Hp, Wp = H + 2 * padding, W + 2 * padding
    hw = Hout * Wout
    ktot = KH * KW * cin_g

    # Fold conv bias + inference BatchNorm into per-channel scale/shift, then fold the
    # scale into the weights so the in-kernel epilogue is shift (+ ReLU) only.
    scale = jnp.ones((Cout,), jnp.float32)
    shift = (jnp.zeros((Cout,), jnp.float32) if bias is None
             else jnp.asarray(bias, jnp.float32))
    if bn is not None:
        gamma, beta, mean, var = (jnp.asarray(a, jnp.float32) for a in bn)
        s = gamma * jax.lax.rsqrt(var + bn_eps)
        scale = scale * s
        shift = (shift - mean) * s + beta

    # (Cout, Cin_g, KH, KW) -> (Cout, KH*KW*Cin_g): a ready bf16 MXU operand whose K
    # ordering (kh, kw, cin) matches the in-kernel im2col concat order.
    w2 = jnp.asarray(weight_oihw, jnp.float32) * scale[:, None, None, None]
    w2 = jnp.transpose(w2, (0, 2, 3, 1)).reshape(Cout, ktot).astype(jnp.bfloat16)
    shift2 = shift.reshape(Cout, 1)

    # Kernel reads NHWC activations (channels on the lane dim for the im2col windows);
    # the output comes back NCHW-flat so only the input needs a layout pass.
    x_nhwc = jnp.transpose(x_nchw, (0, 2, 3, 1))

    itemsize = jnp.dtype(x_nchw.dtype).itemsize
    per_image = (2 * H * W * Cin * itemsize                           # x block, 2x buffered
                 + (Hp * Wp * Cin * itemsize if padding > 0 else 0)   # padded scratch
                 + hw * ktot * 6                                      # f32 + bf16 im2col patch
                 + hw * Cout * 4                                      # f32 matmul result
                 + 2 * hw * Cout * itemsize)                          # out block, 2x buffered
    bt = _pick_batch_block(N, per_image, vmem_budget_bytes)

    kernel = functools.partial(
        _basic_conv_kernel, Hout=Hout, Wout=Wout, KH=KH, KW=KW, stride=stride,
        dilation=dilation, groups=groups, pad=padding, apply_relu=relu,
        fuse_taps=(cin_g < 128))

    scratch_shapes = []
    if padding > 0:
        scratch_shapes.append(pltpu.VMEM((bt, Hp, Wp, Cin), x_nchw.dtype))

    out_flat = pl.pallas_call(
        kernel,
        out_shape=jax.ShapeDtypeStruct((N, Cout, hw), x_nchw.dtype),
        grid_spec=pltpu.PrefetchScalarGridSpec(
            num_scalar_prefetch=0,
            grid=(N // bt,),
            in_specs=[
                pl.BlockSpec((bt, H, W, Cin), lambda b: (b, 0, 0, 0)),
                pl.BlockSpec((Cout, ktot), lambda b: (0, 0)),
                pl.BlockSpec((Cout, 1), lambda b: (0, 0)),
            ],
            out_specs=pl.BlockSpec((bt, Cout, hw), lambda b: (b, 0, 0)),
            scratch_shapes=scratch_shapes,
        ),
        compiler_params=pltpu.CompilerParams(
            dimension_semantics=("parallel",),
            vmem_limit_bytes=32 * 1024 * 1024,
        ),
    )(x_nhwc, w2, shift2)

    return out_flat.reshape(N, Cout, Hout, Wout)


def _reference(x, w, bias, stride, padding, dilation, groups, relu, bn, eps):
    y = jax.lax.conv_general_dilated(
        x, w, (stride, stride), [(padding, padding), (padding, padding)],
        rhs_dilation=(dilation, dilation),
        dimension_numbers=("NCHW", "OIHW", "NCHW"),
        feature_group_count=groups,
        precision=jax.lax.Precision.HIGHEST)
    if bias is not None:
        y = y + bias[None, :, None, None]
    if bn is not None:
        gamma, beta, mean, var = bn
        s = gamma * jax.lax.rsqrt(var + eps)
        y = (y - mean[None, :, None, None]) * s[None, :, None, None] + beta[None, :, None, None]
    if relu:
        y = jnp.maximum(y, 0.0)
    return y


if __name__ == "__main__":
    key = jax.random.PRNGKey(0)

    # ---- Test 1: BasicConv defaults (relu=True, bn=False, bias=False) -----------------
    N, Cin, Cout, H, W = 2, 8, 16, 16, 16
    K, stride, padding, dilation, groups = 3, 1, 1, 1, 1
    k1, k2, key = jax.random.split(key, 3)
    x = jax.random.normal(k1, (N, Cin, H, W), dtype=jnp.float32)
    w = jax.random.normal(k2, (Cout, Cin // groups, K, K), dtype=jnp.float32) * 0.1

    out = basic_conv(x, w, stride=stride, padding=padding, dilation=dilation,
                     groups=groups, relu=True)
    out = jax.block_until_ready(out)
    ref = _reference(x, w, None, stride, padding, dilation, groups, True, None, 1e-5)
    assert out.shape == ref.shape == (N, Cout, H, W)
    err = jnp.max(jnp.abs(out - ref))
    assert jnp.allclose(out, ref, rtol=5e-2, atol=5e-2), f"test1 mismatch: max err {err}"

    # ---- Test 2: grouped + dilated + padded conv with bias + BN + ReLU ------------------
    N, Cin, Cout, H, W = 2, 8, 16, 10, 10
    K, stride, padding, dilation, groups = 3, 1, 1, 2, 2
    ks = jax.random.split(key, 7)
    x = jax.random.normal(ks[0], (N, Cin, H, W), dtype=jnp.float32)
    w = jax.random.normal(ks[1], (Cout, Cin // groups, K, K), dtype=jnp.float32) * 0.1
    b = jax.random.normal(ks[2], (Cout,), dtype=jnp.float32) * 0.1
    gamma = jax.random.uniform(ks[3], (Cout,), jnp.float32, 0.5, 1.5)
    beta = jax.random.normal(ks[4], (Cout,), dtype=jnp.float32)
    mean = jax.random.normal(ks[5], (Cout,), dtype=jnp.float32) * 0.1
    var = jax.random.uniform(ks[6], (Cout,), jnp.float32, 0.5, 1.5)
    bn = (gamma, beta, mean, var)

    out2 = basic_conv(x, w, bias=b, stride=stride, padding=padding, dilation=dilation,
                      groups=groups, relu=True, bn=bn, bn_eps=1e-5)
    out2 = jax.block_until_ready(out2)
    ref2 = _reference(x, w, b, stride, padding, dilation, groups, True, bn, 1e-5)
    assert out2.shape == ref2.shape
    err2 = jnp.max(jnp.abs(out2 - ref2))
    assert jnp.allclose(out2, ref2, rtol=5e-2, atol=5e-2), f"test2 mismatch: max err {err2}"

    print("KERNEL_OK")
</pallas_src>

<mosaic_0001>
module attributes {stable_mosaic.version = 11 : i64} {
  func.func @_basic_conv_kernel(%arg0: i32, %arg1: memref<1x16x16x8xf32, #tpu.memory_space<vmem>>, %arg2: memref<16x72xbf16, #tpu.memory_space<vmem>>, %arg3: memref<16x1xf32, #tpu.memory_space<vmem>>, %arg4: memref<1x16x256xf32, #tpu.memory_space<vmem>>, %arg5: memref<1x18x18x8xf32, #tpu.memory_space<vmem>>) attributes {dimension_semantics = [#tpu.dimension_semantics<parallel>], iteration_bounds = array<i64: 2>, scalar_prefetch = 0 : i64, scratch_operands = 1 : i64, tpu.core_type = #tpu.core_type<tc>, window_params = [{transform_indices = @transform_0, window_bounds = array<i64: 1, 16, 16, 8>}, {pipeline_mode = #tpu.pipeline_mode<synchronous>, transform_indices = @transform_1, window_bounds = array<i64: 16, 72>}, {pipeline_mode = #tpu.pipeline_mode<synchronous>, transform_indices = @transform_2, window_bounds = array<i64: 16, 1>}, {transform_indices = @transform_3, window_bounds = array<i64: 1, 16, 256>}]} {
    %cst = arith.constant 0.000000e+00 : f32
    %0 = vector.broadcast %cst : f32 to vector<1x1x18x8xf32>
    %c0 = arith.constant 0 : index
    %c0_0 = arith.constant 0 : index
    %c0_1 = arith.constant 0 : index
    %c0_2 = arith.constant 0 : index
    %1 = vector.load %arg5[%c0, %c0_0, %c0_1, %c0_2] : memref<1x18x18x8xf32, #tpu.memory_space<vmem>>, vector<1x1x18x8xf32>
    tpu.vector_store %arg5[%c0, %c0_0, %c0_1, %c0_2], %0 {strides = array<i32>} : memref<1x18x18x8xf32, #tpu.memory_space<vmem>>, vector<1x1x18x8xf32>,
    %c0_3 = arith.constant 0 : index
    %c17 = arith.constant 17 : index
    %c0_4 = arith.constant 0 : index
    %c0_5 = arith.constant 0 : index
    %2 = vector.load %arg5[%c0_3, %c17, %c0_4, %c0_5] : memref<1x18x18x8xf32, #tpu.memory_space<vmem>>, vector<1x1x18x8xf32>
    tpu.vector_store %arg5[%c0_3, %c17, %c0_4, %c0_5], %0 {strides = array<i32>} : memref<1x18x18x8xf32, #tpu.memory_space<vmem>>, vector<1x1x18x8xf32>,
    %cst_6 = arith.constant 0.000000e+00 : f32
    %3 = vector.broadcast %cst_6 : f32 to vector<1x16x1x8xf32>
    %c0_7 = arith.constant 0 : index
    %c1 = arith.constant 1 : index
    %c0_8 = arith.constant 0 : index
    %c0_9 = arith.constant 0 : index
    %4 = vector.load %arg5[%c0_7, %c1, %c0_8, %c0_9] : memref<1x18x18x8xf32, #tpu.memory_space<vmem>>, vector<1x16x1x8xf32>
    tpu.vector_store %arg5[%c0_7, %c1, %c0_8, %c0_9], %3 {strides = array<i32>} : memref<1x18x18x8xf32, #tpu.memory_space<vmem>>, vector<1x16x1x8xf32>,
    %c0_10 = arith.constant 0 : index
    %c1_11 = arith.constant 1 : index
    %c17_12 = arith.constant 17 : index
    %c0_13 = arith.constant 0 : index
    %5 = vector.load %arg5[%c0_10, %c1_11, %c17_12, %c0_13] : memref<1x18x18x8xf32, #tpu.memory_space<vmem>>, vector<1x16x1x8xf32>
    tpu.vector_store %arg5[%c0_10, %c1_11, %c17_12, %c0_13], %3 {strides = array<i32>} : memref<1x18x18x8xf32, #tpu.memory_space<vmem>>, vector<1x16x1x8xf32>,
    %c0_14 = arith.constant 0 : index
    %c0_15 = arith.constant 0 : index
    %c0_16 = arith.constant 0 : index
    %c0_17 = arith.constant 0 : index
    %6 = vector.load %arg1[%c0_14, %c0_15, %c0_16, %c0_17] : memref<1x16x16x8xf32, #tpu.memory_space<vmem>>, vector<1x16x16x8xf32>
    %c0_18 = arith.constant 0 : index
    %c1_19 = arith.constant 1 : index
    %c1_20 = arith.constant 1 : index
    %c0_21 = arith.constant 0 : index
    %7 = vector.load %arg5[%c0_18, %c1_19, %c1_20, %c0_21] : memref<1x18x18x8xf32, #tpu.memory_space<vmem>>, vector<1x16x16x8xf32>
    tpu.vector_store %arg5[%c0_18, %c1_19, %c1_20, %c0_21], %6 {strides = array<i32>} : memref<1x18x18x8xf32, #tpu.memory_space<vmem>>, vector<1x16x16x8xf32>,
    %c0_22 = arith.constant 0 : index
    %c0_23 = arith.constant 0 : index
    %8 = vector.load %arg2[%c0_22, %c0_23] : memref<16x72xbf16, #tpu.memory_space<vmem>>, vector<16x72xbf16>
    %c0_24 = arith.constant 0 : index
    %c0_25 = arith.constant 0 : index
    %c0_26 = arith.constant 0 : index
    %c0_27 = arith.constant 0 : index
    %9 = vector.load %arg5[%c0_24, %c0_25, %c0_26, %c0_27] : memref<1x18x18x8xf32, #tpu.memory_space<vmem>>, vector<1x16x16x8xf32>
    %c0_28 = arith.constant 0 : index
    %c0_29 = arith.constant 0 : index
    %c1_30 = arith.constant 1 : index
    %c0_31 = arith.constant 0 : index
    %10 = vector.load %arg5[%c0_28, %c0_29, %c1_30, %c0_31] : memref<1x18x18x8xf32, #tpu.memory_space<vmem>>, vector<1x16x16x8xf32>
    %c0_32 = arith.constant 0 : index
    %c0_33 = arith.constant 0 : index
    %c2 = arith.constant 2 : index
    %c0_34 = arith.constant 0 : index
    %11 = vector.load %arg5[%c0_32, %c0_33, %c2, %c0_34] : memref<1x18x18x8xf32, #tpu.memory_space<vmem>>, vector<1x16x16x8xf32>
    %c0_35 = arith.constant 0 : index
    %c1_36 = arith.constant 1 : index
    %c0_37 = arith.constant 0 : index
    %c0_38 = arith.constant 0 : index
    %12 = vector.load %arg5[%c0_35, %c1_36, %c0_37, %c0_38] : memref<1x18x18x8xf32, #tpu.memory_space<vmem>>, vector<1x16x16x8xf32>
    %c0_39 = arith.constant 0 : index
    %c1_40 = arith.constant 1 : index
    %c1_41 = arith.constant 1 : index
    %c0_42 = arith.constant 0 : index
    %13 = vector.load %arg5[%c0_39, %c1_40, %c1_41, %c0_42] : memref<1x18x18x8xf32, #tpu.memory_space<vmem>>, vector<1x16x16x8xf32>
    %c0_43 = arith.constant 0 : index
    %c1_44 = arith.constant 1 : index
    %c2_45 = arith.constant 2 : index
    %c0_46 = arith.constant 0 : index
    %14 = vector.load %arg5[%c0_43, %c1_44, %c2_45, %c0_46] : memref<1x18x18x8xf32, #tpu.memory_space<vmem>>, vector<1x16x16x8xf32>
    %c0_47 = arith.constant 0 : index
    %c2_48 = arith.constant 2 : index
    %c0_49 = arith.constant 0 : index
    %c0_50 = arith.constant 0 : index
    %15 = vector.load %arg5[%c0_47, %c2_48, %c0_49, %c0_50] : memref<1x18x18x8xf32, #tpu.memory_space<vmem>>, vector<1x16x16x8xf32>
    %c0_51 = arith.constant 0 : index
    %c2_52 = arith.constant 2 : index
    %c1_53 = arith.constant 1 : index
    %c0_54 = arith.constant 0 : index
    %16 = vector.load %arg5[%c0_51, %c2_52, %c1_53, %c0_54] : memref<1x18x18x8xf32, #tpu.memory_space<vmem>>, vector<1x16x16x8xf32>
    %c0_55 = arith.constant 0 : index
    %c2_56 = arith.constant 2 : index
    %c2_57 = arith.constant 2 : index
    %c0_58 = arith.constant 0 : index
    %17 = vector.load %arg5[%c0_55, %c2_56, %c2_57, %c0_58] : memref<1x18x18x8xf32, #tpu.memory_space<vmem>>, vector<1x16x16x8xf32>
    %18 = tpu.concatenate %9, %10, %11, %12, %13, %14, %15, %16, %17 in 3 : vector<1x16x16x8xf32>, vector<1x16x16x8xf32>, vector<1x16x16x8xf32>, vector<1x16x16x8xf32>, vector<1x16x16x8xf32>, vector<1x16x16x8xf32>, vector<1x16x16x8xf32>, vector<1x16x16x8xf32>, vector<1x16x16x8xf32> -> vector<1x16x16x72xf32>
    %19 = vector.shape_cast %18 : vector<1x16x16x72xf32> to vector<256x72xf32>
    %20 = arith.truncf %19 : vector<256x72xf32> to vector<256x72xbf16>
    %cst_59 = arith.constant dense<0.000000e+00> : vector<16x256xf32>
    %21 = tpu.matmul %8, %20, %cst_59 {dimension_numbers = #tpu.dot_dimension_numbers<[1], [1], [0], [0], [0, 0, 1, 0], [], []>} : vector<16x72xbf16>, vector<256x72xbf16>, vector<16x256xf32> -> vector<16x256xf32>
    %c0_60 = arith.constant 0 : index
    %c0_61 = arith.constant 0 : index
    %22 = vector.load %arg3[%c0_60, %c0_61] : memref<16x1xf32, #tpu.memory_space<vmem>>, vector<16x1xf32>
    %23 = vector.broadcast %22 : vector<16x1xf32> to vector<16x256xf32>
    %24 = arith.addf %21, %23 : vector<16x256xf32>
    %cst_62 = arith.constant 0.000000e+00 : f32
    %25 = vector.broadcast %cst_62 : f32 to vector<16x256xf32>
    %26 = arith.maximumf %24, %25 : vector<16x256xf32>
    %c0_63 = arith.constant 0 : index
    %c0_64 = arith.constant 0 : index
    %c0_65 = arith.constant 0 : index
    %27 = vector.load %arg4[%c0_63, %c0_64, %c0_65] : memref<1x16x256xf32, #tpu.memory_space<vmem>>, vector<1x16x256xf32>
    %28 = vector.shape_cast %27 : vector<1x16x256xf32> to vector<16x256xf32>
    %29 = vector.shape_cast %26 : vector<16x256xf32> to vector<1x16x256xf32>
    tpu.vector_store %arg4[%c0_63, %c0_64, %c0_65], %29 {strides = array<i32>} : memref<1x16x256xf32, #tpu.memory_space<vmem>>, vector<1x16x256xf32>,
    return
  }
  func.func @transform_0(%arg0: i32) -> (i32, i32, i32, i32) {
    %c0_i32 = arith.constant 0 : i32
    %c0_i32_0 = arith.constant 0 : i32
    %c0_i32_1 = arith.constant 0 : i32
    %c0_i32_2 = arith.constant 0 : i32
    return %arg0, %c0_i32, %c0_i32_0, %c0_i32_1 : i32, i32, i32, i32
  }
  func.func @transform_1(%arg0: i32) -> (i32, i32) {
    %c0_i32 = arith.constant 0 : i32
    %c0_i32_0 = arith.constant 0 : i32
    %c0_i32_1 = arith.constant 0 : i32
    return %c0_i32, %c0_i32_0 : i32, i32
  }
  func.func @transform_2(%arg0: i32) -> (i32, i32) {
    %c0_i32 = arith.constant 0 : i32
    %c0_i32_0 = arith.constant 0 : i32
    %c0_i32_1 = arith.constant 0 : i32
    return %c0_i32, %c0_i32_0 : i32, i32
  }
  func.func @transform_3(%arg0: i32) -> (i32, i32, i32) {
    %c0_i32 = arith.constant 0 : i32
    %c0_i32_0 = arith.constant 0 : i32
    %c0_i32_1 = arith.constant 0 : i32
    return %arg0, %c0_i32, %c0_i32_0 : i32, i32, i32
  }
}

</mosaic_0001>

<bundles_post_ra>
// kernel: tpu_custom_call.1
= control target key start
LH: loop header
LB: loop body
LE: loop exit
PB: predicated region body
PF: predicated region fallthrough
CT: control target
= control target key end

     0   :  { %8 = vsyncpa [#allocation4], 0  ;;  %s4150_s0 = inlined_call_operand.vmem [shape: f32[2,16,16,8], index: 0, kind: input, shape index: {}]   ;;  %s4151_s1 = inlined_call_operand.vmem [shape: bf16[16,72], index: 1, kind: input, shape index: {}]   ;;  %s4152_s2 = inlined_call_operand.vmem [shape: f32[16,1], index: 2, kind: input, shape index: {}]   ;;  %s4153_s3 = inlined_call_operand.hbm [shape: f32[2,16,256], index: 3, kind: output, shape index: {}]  }
   0x1   :  { %10 = vsyncpa [#allocation4 + $0x1], 0  ;;  %s2861_s12 = smov 0   ;;  %s2863_s13 = smov 0  }
   0x2   :  { %s2865_s14 = smov 0   ;;  %s2867_s15 = smov 0  }
   0x3 LB: > { %s2882_s16 = sadd.s32 4294967295, %s2828_s15   ;;  %s2053_s17 = sadd.s32 4294967294, %s2828_s15   ;;  %s2828_s15 = sphi %s2867_s15, %s4218_s15   ;;  %s2824_s14 = sphi %s2865_s14, %s4217_s14   ;;  %s2820_s13 = sphi %s2863_s13, %s4216_s13   ;;  %s2816_s12 = sphi %s2861_s12, %s4215_s12  }
   0x4   : > { %s2886_s18 = sadd.s32 1, %s2828_s15   ;;  %s91_s19 = sadd.s32 1, %s2824_s14 }
   0x5   : > { %s88_s20 = ssub.s32 %s2828_s15, %s2886_s18  ;;  %p101_p0 = scmp.ne.s32.totalorder %s2824_s14, %s2820_s13 }
   0x6   : > { %p89_p1 = scmp.eq.s32.totalorder %s88_s20, 0  ;;  %p102_p2 = scmp.eq.s32.totalorder %s2882_s16, 1 }
   0x7   : > { %p107_p3 = scmp.ne.s32.totalorder %s2820_s13, %s2816_s12  ;;  %p108_p4 = scmp.eq.s32.totalorder %s2053_s17, 1 }
   0x8   : > { %s2897_s21 = scalar_select %p89_p1, %s2824_s14, %s91_s19  }
   0x9   : > { %p2899_p5 = por %p102_p2, %p101_p0  ;;  %p2903_p6 = por %p108_p4, %p107_p3 }
   0xa   : > { %p2056_p7 = scmp.ge.s32.totalorder %s2828_s15, 1  ;;  %p140_p8 = scmp.lt.s32.totalorder %s2828_s15, 3 }
   0xc   : > { %p141_p9 = pnand %p2056_p7, %p140_p8 }
   0xe   : > { %144 = sbr.rel (%p141_p9) target bundleno = 645 (0x285), region = 32 }
  0x13   : > { %vm169_vm0 = vcmask 64512   ;;  %vm172_vm1 = vcmask 58368   ;;  %p164_p10 = scmp.lt.s32.totalorder %s2882_s16, 1  ;;  %v2830_v0 = vmov 0.0   ;;  %s2831_s29 = smov 8   ;;  %vm179_vm2 = vcmask 57344  }
  0x14   : > { %170 = vst.msk [vmem:[#allocation2] sm:$0xff] %vm169_vm0, %v2830_v0  ;;  %s2832_s30 = smov 16   ;;  %s2833_s4 = smov 24   ;;  %vm1623_vm3 = vcmask 130048   ;;  %vm1656_vm4 = vcmask 195584   ;;  %vm1689_vm5 = vcmask 261120  }
  0x15   : > { %171 = vst.msk [vmem:[#allocation2 + $0x8] sm:$0xff] %vm169_vm0, %v2830_v0  ;;  %s165_s24 = scalar_select %p164_p10, %s2882_s16, 1  ;;  %vm1722_vm6 = vcmask 326656   ;;  %vm1755_vm7 = vcmask 392192   ;;  %vm1821_vm8 = vcmask 523264   ;;  %vm1788_vm9 = vcmask 457728  }
  0x16   : > { %173 = vst.msk [vmem:[#allocation2 + $0x10] sm:$0x3] %vm172_vm1, %v2830_v0  ;;  %s2834_s5 = smov 32   ;;  %s2835_s6 = smov 40   ;;  %vm1887_vm10 = vcmask 588800  }
  0x17   : > { %177 = vst.msk [vmem:[#allocation2 + $0x1a8] sm:$0x3] %vm172_vm1, %v2830_v0  ;;  %s2071_s25 = sshll.u32 %s165_s24, 8  ;;  %s2836_s7 = smov 48  }
  0x18   : > { %175 = vst.msk [vmem:[#allocation2 + $0x198] sm:$0xff] %vm169_vm0, %v2830_v0  ;;  %s2922_s28 = scalar_lea.vmem %s4150_s0, %s2071_s25  ;;  %s2837_s8 = smov 56  }
  0x19   : > { %176 = vst.msk [vmem:[#allocation2 + $0x1a0] sm:$0xff] %vm169_vm0, %v2830_v0  ;;  %v218_v1 = vld [vmem:[%s2922_s28 + $0x30] sm:$0xff]  ;;  %v219_v2 = vld [vmem:[%s2922_s28 + $0x38] sm:$0xff]  ;;  %v212_v5 = vld [vmem:[%s2922_s28] sm:$0xff]  ;;  %s2838_s9 = smov 64   ;;  %s161_s25 = sand.u32 1, %s2820_s13  }
  0x1a   : > { %v214_v3 = vld [vmem:[%s2922_s28 + $0x10] sm:$0xff]  ;;  %250 = vst.msk [vmem:[#allocation2 + $0x61] sm:$0xff] %vm169_vm0, %v218_v1  ;;  %v215_v4 = vld [vmem:[%s2922_s28 + $0x18] sm:$0xff]  ;;  %v213_v7 = vld [vmem:[%s2922_s28 + $0x8] sm:$0xff]  ;;  %s2057_s26 = sshll.u32 %s161_s25, 5  ;;  %s2786_s17 = scalar_lea.hbm %s4153_s3, 64 }
  0x1b   : > { %251 = vst.msk [vmem:[#allocation2 + $0x69] sm:$0xff] %vm169_vm0, %v219_v2  ;;  %v220_v9 = vld [vmem:[%s2922_s28 + $0x40] sm:$0xff]  ;;  %v221_v11 = vld [vmem:[%s2922_s28 + $0x48] sm:$0xff]  ;;  %v222_v15 = vld [vmem:[%s2922_s28 + $0x50] sm:$0xff]  ;;  %s163_s27 = scalar_lea.vmem [#allocation3], %s2057_s26 }
  0x1c   : > { %v310_v6 = vld [vmem:[#allocation2 + $0x1] sm:$0xff]  ;;  %246 = vst.msk [vmem:[#allocation2 + $0x31] sm:$0xff] %vm169_vm0, %v214_v3  ;;  %v223_v17 = vld [vmem:[%s2922_s28 + $0x58] sm:$0xff]  ;;  %v226_v20 = vld [vmem:[%s2922_s28 + $0x70] sm:$0xff] }
  0x1d   : > { %v311_v8 = vld [vmem:[#allocation2 + $0x9] sm:$0xff]  ;;  %247 = vst.msk [vmem:[#allocation2 + $0x39] sm:$0xff] %vm169_vm0, %v215_v4  ;;  %v216_v12 = vld [vmem:[%s2922_s28 + $0x20] sm:$0xff]  ;;  %v227_v22 = vld [vmem:[%s2922_s28 + $0x78] sm:$0xff] }
  0x1e   : > { %v2124_v10 = vpack.i.bf16 %v311_v8, %v310_v6  ;;  %244 = vst.msk [vmem:[#allocation2 + $0x19] sm:$0xff] %vm169_vm0, %v212_v5  ;;  %v217_v13 = vld [vmem:[%s2922_s28 + $0x28] sm:$0xff]  ;;  %v224_v25 = vld [vmem:[%s2922_s28 + $0x60] sm:$0xff]  ;;  %v230_v40 = vld [vmem:[%s2922_s28 + $0x90] sm:$0xff] }
  0x1f   : > { %245 = vst.msk [vmem:[#allocation2 + $0x21] sm:$0xff] %vm169_vm0, %v213_v7  ;;  %v225_v27 = vld [vmem:[%s2922_s28 + $0x68] sm:$0xff]  ;;  %v228_v30 = vld [vmem:[%s2922_s28 + $0x80] sm:$0xff]  ;;  %v231_v42 = vld [vmem:[%s2922_s28 + $0x98] sm:$0xff] }
  0x20   : > { %2125 = vrot.lane.b32.xlu0 %v2124_v10, %s2831_s29  ;;  %252 = vst.msk [vmem:[#allocation2 + $0x79] sm:$0xff] %vm169_vm0, %v220_v9  ;;  %v229_v32 = vld [vmem:[%s2922_s28 + $0x88] sm:$0xff]  ;;  %v232_v35 = vld [vmem:[%s2922_s28 + $0xa0] sm:$0xff]  ;;  %v234_v44 = vld [vmem:[%s2922_s28 + $0xb0] sm:$0xff] }
  0x21   : > { %v318_v14 = vld [vmem:[#allocation2 + $0x61] sm:$0xff]  ;;  %253 = vst.msk [vmem:[#allocation2 + $0x81] sm:$0xff] %vm169_vm0, %v221_v11  ;;  %v235_v47 = vld [vmem:[%s2922_s28 + $0xb8] sm:$0xff]  ;;  %v238_v48 = vld [vmem:[%s2922_s28 + $0xd0] sm:$0xff] }
  0x22   : > { %v319_v16 = vld [vmem:[#allocation2 + $0x69] sm:$0xff]  ;;  %248 = vst.msk [vmem:[#allocation2 + $0x49] sm:$0xff] %vm169_vm0, %v216_v12  ;;  %v239_v51 = vld [vmem:[%s2922_s28 + $0xd8] sm:$0xff]  ;;  %v236_v53 = vld [vmem:[%s2922_s28 + $0xc0] sm:$0xff] }
  0x23   : > { %v2948_v18 = vpack.i.bf16 %v319_v16, %v318_v14  ;;  %v314_v19 = vld [vmem:[#allocation2 + $0x31] sm:$0xff]  ;;  %249 = vst.msk [vmem:[#allocation2 + $0x51] sm:$0xff] %vm169_vm0, %v217_v13  ;;  %v233_v37 = vld [vmem:[%s2922_s28 + $0xa8] sm:$0xff]  ;;  %v240_v58 = vld [vmem:[%s2922_s28 + $0xe0] sm:$0xff] }
  0x24   : > { %v315_v21 = vld [vmem:[#allocation2 + $0x39] sm:$0xff]  ;;  %254 = vst.msk [vmem:[#allocation2 + $0x91] sm:$0xff] %vm169_vm0, %v222_v15  ;;  %v237_v56 = vld [vmem:[%s2922_s28 + $0xc8] sm:$0xff] }
  0x25   : > { %2145 = vrot.lane.b32.xlu2 %v2948_v18, %s2831_s29  ;;  %v2956_v23 = vpack.i.bf16 %v315_v21, %v314_v19  ;;  %v312_v24 = vld [vmem:[#allocation2 + $0x19] sm:$0xff]  ;;  %255 = vst.msk [vmem:[#allocation2 + $0x99] sm:$0xff] %vm169_vm0, %v223_v17  ;;  %v241_v59 = vld [vmem:[%s2922_s28 + $0xe8] sm:$0xff] }
  0x26   : > { %v313_v26 = vld [vmem:[#allocation2 + $0x21] sm:$0xff]  ;;  %258 = vst.msk [vmem:[#allocation2 + $0xc1] sm:$0xff] %vm169_vm0, %v226_v20  ;;  %v343_v20 = vld [vmem:[#allocation2 + $0xa] sm:$0xff] }
  0x27   : > { %2135 = vrot.lane.b32.xlu1 %v2956_v23, %s2831_s29  ;;  %v2964_v28 = vpack.i.bf16 %v313_v26, %v312_v24  ;;  %v320_v29 = vld [vmem:[#allocation2 + $0x79] sm:$0xff]  ;;  %259 = vst.msk [vmem:[#allocation2 + $0xc9] sm:$0xff] %vm169_vm0, %v227_v22  ;;  %v342_v19 = vld [vmem:[#allocation2 + $0x2] sm:$0xff] }
  0x28   : > { %v321_v31 = vld [vmem:[#allocation2 + $0x81] sm:$0xff]  ;;  %256 = vst.msk [vmem:[#allocation2 + $0xa9] sm:$0xff] %vm169_vm0, %v224_v25  ;;  %v2204_v22 = vpack.i.bf16 %v343_v20, %v342_v19  ;;  %v346_v24 = vld [vmem:[#allocation2 + $0x32] sm:$0xff] }
  0x29   : > { %2130 = vrot.lane.b32.xlu0 %v2964_v28, %s2831_s29  ;;  %v2972_v33 = vpack.i.bf16 %v321_v31, %v320_v29  ;;  %v316_v34 = vld [vmem:[#allocation2 + $0x49] sm:$0xff]  ;;  %257 = vst.msk [vmem:[#allocation2 + $0xb1] sm:$0xff] %vm169_vm0, %v225_v27  ;;  %v344_v16 = vld [vmem:[#allocation2 + $0x1a] sm:$0xff] }
  0x2a   : > { %v317_v36 = vld [vmem:[#allocation2 + $0x51] sm:$0xff]  ;;  %260 = vst.msk [vmem:[#allocation2 + $0xd9] sm:$0xff] %vm169_vm0, %v228_v30  ;;  %v350_v27 = vld [vmem:[#allocation2 + $0x62] sm:$0xff] }
  0x2b   : > { %v2978_v38 = vpack.i.bf16 %v317_v36, %v316_v34  ;;  %v322_v39 = vld [vmem:[#allocation2 + $0x91] sm:$0xff]  ;;  %261 = vst.msk [vmem:[#allocation2 + $0xe1] sm:$0xff] %vm169_vm0, %v229_v32 }
  0x2c   : > { %v323_v41 = vld [vmem:[#allocation2 + $0x99] sm:$0xff]  ;;  %264 = vst.msk [vmem:[#allocation2 + $0x109] sm:$0xff] %vm169_vm0, %v232_v35  ;;  %v348_v26 = vld [vmem:[#allocation2 + $0x4a] sm:$0xff] }
  0x2d   : > { %2150 = vrot.lane.b32.xlu2 %v2972_v33, %s2831_s29  ;;  %v2986_v43 = vpack.i.bf16 %v323_v41, %v322_v39  ;;  %265 = vst.msk [vmem:[#allocation2 + $0x111] sm:$0xff] %vm169_vm0, %v233_v37  ;;  %v326_v45 = vld [vmem:[#allocation2 + $0xc1] sm:$0xff]  ;;  %v354_v41 = vld [vmem:[#allocation2 + $0x92] sm:$0xff] }
  0x2e   : > { %v327_v46 = vld [vmem:[#allocation2 + $0xc9] sm:$0xff]  ;;  %262 = vst.msk [vmem:[#allocation2 + $0xf1] sm:$0xff] %vm169_vm0, %v230_v40  ;;  %v352_v35 = vld [vmem:[#allocation2 + $0x7a] sm:$0xff] }
  0x2f   : > { %2140 = vrot.lane.b32.xlu1 %v2978_v38, %s2831_s29  ;;  %263 = vst.msk [vmem:[#allocation2 + $0xf9] sm:$0xff] %vm169_vm0, %v231_v42  ;;  %v324_v49 = vld [vmem:[#allocation2 + $0xa9] sm:$0xff]  ;;  %v3000_v52 = vpack.i.bf16 %v327_v46, %v326_v45  ;;  %v3178_v20 = vld [vmem:[#allocation2 + $0x38] sm:$0xff] }
  0x30   : > { %v325_v50 = vld [vmem:[#allocation2 + $0xb1] sm:$0xff]  ;;  %266 = vst.msk [vmem:[#allocation2 + $0x121] sm:$0xff] %vm169_vm0, %v234_v44  ;;  %v358_v46 = vld [vmem:[#allocation2 + $0xc2] sm:$0xff] }
  0x31   : > { %2155 = vrot.lane.b32.xlu0 %v2986_v43, %s2831_s29  ;;  %267 = vst.msk [vmem:[#allocation2 + $0x129] sm:$0xff] %vm169_vm0, %v235_v47  ;;  %v328_v54 = vld [vmem:[#allocation2 + $0xd9] sm:$0xff]  ;;  %v3006_v57 = vpack.i.bf16 %v325_v50, %v324_v49  ;;  %v356_v37 = vld [vmem:[#allocation2 + $0xaa] sm:$0xff] }
  0x32   : > { %v329_v55 = vld [vmem:[#allocation2 + $0xe1] sm:$0xff]  ;;  %270 = vst.msk [vmem:[#allocation2 + $0x151] sm:$0xff] %vm169_vm0, %v238_v48 }
  0x33   : > { %271 = vst.msk [vmem:[#allocation2 + $0x159] sm:$0xff] %vm169_vm0, %v239_v51  ;;  %v3014_v60 = vpack.i.bf16 %v329_v55, %v328_v54  ;;  %v332_v61 = vld [vmem:[#allocation2 + $0x109] sm:$0xff]  ;;  %v360_v50 = vld [vmem:[#allocation2 + $0xda] sm:$0xff] }
  0x34   : > { %268 = vst.msk [vmem:[#allocation2 + $0x139] sm:$0xff] %vm169_vm0, %v236_v53  ;;  %v333_v62 = vld [vmem:[#allocation2 + $0x111] sm:$0xff] }
  0x35   : > { %2165 = vrot.lane.b32.xlu2 %v3000_v52, %s2831_s29  ;;  %269 = vst.msk [vmem:[#allocation2 + $0x141] sm:$0xff] %vm169_vm0, %v237_v56  ;;  %v330_v63 = vld [vmem:[#allocation2 + $0xf1] sm:$0xff]  ;;  %v3025_v2 = vpack.i.bf16 %v333_v62, %v332_v61 }
  0x36   : > { %272 = vst.msk [vmem:[#allocation2 + $0x169] sm:$0xff] %vm169_vm0, %v240_v58  ;;  %v331_v1 = vld [vmem:[#allocation2 + $0xf9] sm:$0xff]  ;;  %v364_v55 = vld [vmem:[#allocation2 + $0x10a] sm:$0xff] }
  0x37   : > { %2160 = vrot.lane.b32.xlu1 %v3006_v57, %s2831_s29  ;;  %273 = vst.msk [vmem:[#allocation2 + $0x171] sm:$0xff] %vm169_vm0, %v241_v59  ;;  %v334_v3 = vld [vmem:[#allocation2 + $0x121] sm:$0xff]  ;;  %v3031_v5 = vpack.i.bf16 %v331_v1, %v330_v63 }
  0x38   : > { %196 = vst.msk [vmem:[#allocation2 + $0x29] sm:$0x1] %vm179_vm2, %v2830_v0  ;;  %v335_v4 = vld [vmem:[#allocation2 + $0x129] sm:$0xff] }
  0x39   : > { %2170 = vrot.lane.b32.xlu0 %v3014_v60, %s2831_s29  ;;  %180 = vst.msk [vmem:[#allocation2 + $0x18] sm:$0x1] %vm179_vm2, %v2830_v0  ;;  %v3039_v6 = vpack.i.bf16 %v335_v4, %v334_v3  ;;  %v338_v7 = vld [vmem:[#allocation2 + $0x151] sm:$0xff]  ;;  %v366_v62 = vld [vmem:[#allocation2 + $0x122] sm:$0xff] }
  0x3a   : > { %181 = vst.msk [vmem:[#allocation2 + $0x30] sm:$0x1] %vm179_vm2, %v2830_v0  ;;  %v339_v8 = vld [vmem:[#allocation2 + $0x159] sm:$0xff] }
  0x3b   : > { %182 = vst.msk [vmem:[#allocation2 + $0x48] sm:$0x1] %vm179_vm2, %v2830_v0  ;;  %v336_v9 = vld [vmem:[#allocation2 + $0x139] sm:$0xff]  ;;  %v3053_v11 = vpack.i.bf16 %v339_v8, %v338_v7 }
  0x3c   : > { %183 = vst.msk [vmem:[#allocation2 + $0x60] sm:$0x1] %vm179_vm2, %v2830_v0  ;;  %v337_v10 = vld [vmem:[#allocation2 + $0x141] sm:$0xff]  ;;  %v370_v4 = vld [vmem:[#allocation2 + $0x152] sm:$0xff] }
  0x3d   : > { %2180 = vrot.lane.b32.xlu2 %v3025_v2, %s2831_s29  ;;  %184 = vst.msk [vmem:[#allocation2 + $0x78] sm:$0x1] %vm179_vm2, %v2830_v0  ;;  %v340_v12 = vld [vmem:[#allocation2 + $0x169] sm:$0xff]  ;;  %v3059_v14 = vpack.i.bf16 %v337_v10, %v336_v9  ;;  %v368_v58 = vld [vmem:[#allocation2 + $0x13a] sm:$0xff] }
  0x3e   : > { %185 = vst.msk [vmem:[#allocation2 + $0x90] sm:$0x1] %vm179_vm2, %v2830_v0  ;;  %v341_v13 = vld [vmem:[#allocation2 + $0x171] sm:$0xff]  ;;  %v3164_v9 = vld [vmem:[#allocation2 + $0x20] sm:$0xff] }
  0x3f   : > { %2175 = vrot.lane.b32.xlu1 %v3031_v5, %s2831_s29  ;;  %186 = vst.msk [vmem:[#allocation2 + $0xa8] sm:$0x1] %vm179_vm2, %v2830_v0  ;;  %v3067_v15 = vpack.i.bf16 %v341_v13, %v340_v12  ;;  %v345_v17 = vld [vmem:[#allocation2 + $0x22] sm:$0xff]  ;;  %v372_v12 = vld [vmem:[#allocation2 + $0x16a] sm:$0xff] }
  0x40   : > { %187 = vst.msk [vmem:[#allocation2 + $0xc0] sm:$0x1] %vm179_vm2, %v2830_v0  ;;  %v3081_v21 = vpack.i.bf16 %v345_v17, %v344_v16  ;;  %v3162_v8 = vld [vmem:[#allocation2 + $0x18] sm:$0xff] }
  0x41   : > { %2185 = vrot.lane.b32.xlu0 %v3039_v6, %s2831_s29  ;;  %188 = vst.msk [vmem:[#allocation2 + $0xd8] sm:$0x1] %vm179_vm2, %v2830_v0  ;;  %v2284_v16 = vpack.i.bf16 %v3164_v9, %v3162_v8  ;;  %v3176_v19 = vld [vmem:[#allocation2 + $0x30] sm:$0xff] }
  0x42   : > { %189 = vst.msk [vmem:[#allocation2 + $0xf0] sm:$0x1] %vm179_vm2, %v2830_v0 }
  0x43   : > { %190 = vst.msk [vmem:[#allocation2 + $0x108] sm:$0x1] %vm179_vm2, %v2830_v0 }
  0x44   : > { %191 = vst.msk [vmem:[#allocation2 + $0x120] sm:$0x1] %vm179_vm2, %v2830_v0 }
  0x45   : > { %2195 = vrot.lane.b32.xlu2 %v3053_v11, %s2831_s29  ;;  %192 = vst.msk [vmem:[#allocation2 + $0x138] sm:$0x1] %vm179_vm2, %v2830_v0 }
  0x46   : > { %193 = vst.msk [vmem:[#allocation2 + $0x150] sm:$0x1] %vm179_vm2, %v2830_v0 }
  0x47   : > { %2190 = vrot.lane.b32.xlu1 %v3059_v14, %s2831_s29  ;;  %194 = vst.msk [vmem:[#allocation2 + $0x168] sm:$0x1] %vm179_vm2, %v2830_v0 }
  0x48   : > { %195 = vst.msk [vmem:[#allocation2 + $0x180] sm:$0x1] %vm179_vm2, %v2830_v0 }
  0x49   : > { %2200 = vrot.lane.b32.xlu0 %v3067_v15, %s2831_s29  ;;  %197 = vst.msk [vmem:[#allocation2 + $0x41] sm:$0x1] %vm179_vm2, %v2830_v0 }
  0x4a   : > { %198 = vst.msk [vmem:[#allocation2 + $0x59] sm:$0x1] %vm179_vm2, %v2830_v0 }
  0x4b   : > { %199 = vst.msk [vmem:[#allocation2 + $0x71] sm:$0x1] %vm179_vm2, %v2830_v0 }
  0x4c   : > { %200 = vst.msk [vmem:[#allocation2 + $0x89] sm:$0x1] %vm179_vm2, %v2830_v0 }
  0x4d   : > { %2210 = vrot.lane.b32.xlu2 %v3081_v21, %s2832_s30  ;;  %201 = vst.msk [vmem:[#allocation2 + $0xa1] sm:$0x1] %vm179_vm2, %v2830_v0 }
  0x4e   : > { %202 = vst.msk [vmem:[#allocation2 + $0xb9] sm:$0x1] %vm179_vm2, %v2830_v0 }
  0x4f   : > { %2205 = vrot.lane.b32.xlu1 %v2204_v22, %s2832_s30  ;;  %203 = vst.msk [vmem:[#allocation2 + $0xd1] sm:$0x1] %vm179_vm2, %v2830_v0  ;;  %v380_v22 = vld [vmem:[#allocation2 + $0x60] sm:$0xff] }
  0x50   : > { %204 = vst.msk [vmem:[#allocation2 + $0xe9] sm:$0x1] %vm179_vm2, %v2830_v0  ;;  %v347_v25 = vld [vmem:[#allocation2 + $0x3a] sm:$0xff] }
  0x51   : > { %205 = vst.msk [vmem:[#allocation2 + $0x101] sm:$0x1] %vm179_vm2, %v2830_v0  ;;  %v3104_v29 = vpack.i.bf16 %v347_v25, %v346_v24  ;;  %v349_v30 = vld [vmem:[#allocation2 + $0x52] sm:$0xff]  ;;  %v381_v24 = vld [vmem:[#allocation2 + $0x68] sm:$0xff] }
  0x52   : > { %206 = vst.msk [vmem:[#allocation2 + $0x119] sm:$0x1] %vm179_vm2, %v2830_v0  ;;  %v351_v31 = vld [vmem:[#allocation2 + $0x6a] sm:$0xff]  ;;  %v3112_v32 = vpack.i.bf16 %v349_v30, %v348_v26  ;;  %v3186_v26 = vpack.i.bf16 %v3178_v20, %v3176_v19 }
  0x53   : > { %207 = vst.msk [vmem:[#allocation2 + $0x131] sm:$0x1] %vm179_vm2, %v2830_v0  ;;  %2215 = vrot.lane.b32.xlu0 %v3104_v29, %s2832_s30  ;;  %v3114_v34 = vpack.i.bf16 %v351_v31, %v350_v27  ;;  %v353_v36 = vld [vmem:[#allocation2 + $0x82] sm:$0xff]  ;;  %v242_v25 = vld [vmem:[%s2922_s28 + $0xf0] sm:$0xff]  ;;  %v243_v27 = vld [vmem:[%s2922_s28 + $0xf8] sm:$0xff]  ;;  %s2073_s28 = sshll.u32 %s2882_s16, 5 }
  0x54   : > { %208 = vst.msk [vmem:[#allocation2 + $0x149] sm:$0x1] %vm179_vm2, %v2830_v0  ;;  %v3128_v40 = vpack.i.bf16 %v353_v36, %v352_v35  ;;  %v355_v42 = vld [vmem:[#allocation2 + $0x9a] sm:$0xff]  ;;  %v3190_v30 = vld [vmem:[#allocation2 + $0x48] sm:$0xff]  ;;  %v3192_v31 = vld [vmem:[#allocation2 + $0x50] sm:$0xff]  ;;  %v3195_v35 = vpack.i.bf16 %v381_v24, %v380_v22  ;;  %s1976_s16 = scalar_lea.sflag [#allocation4], %s161_s25 }
  0x55   : > { %209 = vst.msk [vmem:[#allocation2 + $0x161] sm:$0x1] %vm179_vm2, %v2830_v0  ;;  %2225 = vrot.lane.b32.xlu2 %v3114_v34, %s2832_s30  ;;  %v357_v39 = vld [vmem:[#allocation2 + $0xb2] sm:$0xff]  ;;  %v3134_v45 = vpack.i.bf16 %v355_v42, %v354_v41  ;;  %v3201_v36 = vpack.i.bf16 %v3192_v31, %v3190_v30  ;;  %v3205_v41 = vld [vmem:[#allocation2 + $0xa8] sm:$0xff] }
  0x56   : > { %210 = vst.msk [vmem:[#allocation2 + $0x179] sm:$0x1] %vm179_vm2, %v2830_v0  ;;  %v3130_v44 = vpack.i.bf16 %v357_v39, %v356_v37  ;;  %v359_v47 = vld [vmem:[#allocation2 + $0xca] sm:$0xff]  ;;  %v382_v37 = vld [vmem:[#allocation2 + $0x78] sm:$0xff]  ;;  %v383_v39 = vld [vmem:[#allocation2 + $0x80] sm:$0xff] }
  0x57   : > { %211 = vst.msk [vmem:[#allocation2 + $0x191] sm:$0x1] %vm179_vm2, %v2830_v0  ;;  %2220 = vrot.lane.b32.xlu1 %v3112_v32, %s2832_s30  ;;  %v362_v0 = vld [vmem:[#allocation2 + $0xf2] sm:$0xff]  ;;  %v3140_v49 = vpack.i.bf16 %v359_v47, %v358_v46  ;;  %v361_v51 = vld [vmem:[#allocation2 + $0xe2] sm:$0xff]  ;;  %v3211_v47 = vpack.i.bf16 %v383_v39, %v382_v37 }
  0x58   : > { %4175 = vst [vmem:[#allocation6_spill] sm:$0xff] %v3130_v44  ;;  %v363_v48 = vld [vmem:[#allocation2 + $0xfa] sm:$0xff]  ;;  %v3146_v54 = vpack.i.bf16 %v361_v51, %v360_v50  ;;  %v3207_v42 = vld [vmem:[#allocation2 + $0xb0] sm:$0xff] }
  0x59   : > { %v3142_v53 = vpack.i.bf16 %v363_v48, %v362_v0  ;;  %v365_v56 = vld [vmem:[#allocation2 + $0x112] sm:$0xff]  ;;  %4183 = vst [vmem:[#allocation14_spill] sm:$0xff] %v3186_v26 }
  0x5a   : > { %4177 = vst [vmem:[#allocation8_spill] sm:$0xff] %v3146_v54  ;;  %v3152_v61 = vpack.i.bf16 %v365_v56, %v364_v55  ;;  %v367_v63 = vld [vmem:[#allocation2 + $0x12a] sm:$0xff]  ;;  %v3215_v51 = vld [vmem:[#allocation2 + $0x98] sm:$0xff]  ;;  %v3219_v55 = vpack.i.bf16 %v3207_v42, %v3205_v41 }
  0x5b   : > { %2230 = vrot.lane.b32.xlu0 %v3128_v40, %s2832_s30  ;;  %4176 = vst [vmem:[#allocation7_spill] sm:$0xff] %v3142_v53  ;;  %v369_v59 = vld [vmem:[#allocation2 + $0x142] sm:$0xff]  ;;  %v3158_v3 = vpack.i.bf16 %v367_v63, %v366_v62  ;;  %v3213_v50 = vld [vmem:[#allocation2 + $0x90] sm:$0xff] }
  0x5c   : > { %4178 = vst [vmem:[#allocation9_spill] sm:$0xff] %v3152_v61  ;;  %v3154_v1 = vpack.i.bf16 %v369_v59, %v368_v58  ;;  %v371_v7 = vld [vmem:[#allocation2 + $0x15a] sm:$0xff]  ;;  %v3231_v59 = vpack.i.bf16 %v3215_v51, %v3213_v50  ;;  %v389_v63 = vld [vmem:[#allocation2 + $0xc8] sm:$0xff] }
  0x5d   : > { %2240 = vrot.lane.b32.xlu2 %v3130_v44, %s2832_s30  ;;  %4180 = vst [vmem:[#allocation11_spill] sm:$0xff] %v3158_v3  ;;  %v3168_v10 = vpack.i.bf16 %v371_v7, %v370_v4  ;;  %v373_v13 = vld [vmem:[#allocation2 + $0x172] sm:$0xff]  ;;  %v388_v62 = vld [vmem:[#allocation2 + $0xc0] sm:$0xff] }
  0x5e   : > { %4179 = vst [vmem:[#allocation10_spill] sm:$0xff] %v3154_v1  ;;  %v3174_v17 = vpack.i.bf16 %v373_v13, %v372_v12  ;;  %v3235_v4 = vld [vmem:[#allocation2 + $0xf0] sm:$0xff]  ;;  %v3237_v7 = vld [vmem:[#allocation2 + $0xf8] sm:$0xff]  ;;  %v3241_v13 = vpack.i.bf16 %v389_v63, %v388_v62 }
  0x5f   : > { %2235 = vrot.lane.b32.xlu1 %v3134_v45, %s2832_s30  ;;  %4181 = vst [vmem:[#allocation12_spill] sm:$0xff] %v3168_v10 }
  0x60   : > { %4182 = vst [vmem:[#allocation13_spill] sm:$0xff] %v3174_v17 }
  0x61   : > { %274 = vst.msk [vmem:[#allocation2 + $0x181] sm:$0xff] %vm169_vm0, %v242_v25  ;;  %v3245_v25 = vld [vmem:[#allocation2 + $0xe0] sm:$0xff] }
  0x62   : > { %275 = vst.msk [vmem:[#allocation2 + $0x189] sm:$0xff] %vm169_vm0, %v243_v27  ;;  %v3249_v27 = vpack.i.bf16 %v3237_v7, %v3235_v4 }
  0x63   : > { %2245 = vrot.lane.b32.xlu0 %v3140_v49, %s2832_s30  ;;  %4184 = vst [vmem:[#allocation15_spill] sm:$0xff] %v3195_v35 }
  0x64   : > { %4185 = vst [vmem:[#allocation16_spill] sm:$0xff] %v3201_v36 }
  0x65   : > { %2255 = vrot.lane.b32.xlu2 %v3142_v53, %s2832_s30  ;;  %4186 = vst [vmem:[#allocation17_spill] sm:$0xff] %v3211_v47 }
  0x66   : > { %4187 = vst [vmem:[#allocation18_spill] sm:$0xff] %v3219_v55 }
  0x67   : > { %2250 = vrot.lane.b32.xlu1 %v3146_v54, %s2832_s30  ;;  %4188 = vst [vmem:[#allocation19_spill] sm:$0xff] %v3231_v59 }
  0x68   : > { %4189 = vst [vmem:[#allocation20_spill] sm:$0xff] %v3241_v13 }
  0x69   : > { %4190 = vst [vmem:[#allocation21_spill] sm:$0xff] %v3249_v27 }
  0x6b   : > { %2260 = vrot.lane.b32.xlu0 %v3152_v61, %s2832_s30  ;;  %v3292_v61 = vld [vmem:[#allocation2 + $0x170] sm:$0xff] }
  0x6d   : > { %2270 = vrot.lane.b32.xlu2 %v3154_v1, %s2832_s30  ;;  %v401_v1 = vld [vmem:[#allocation2 + $0x158] sm:$0xff] }
  0x6f   : > { %2265 = vrot.lane.b32.xlu1 %v3158_v3, %s2832_s30  ;;  %v405_v3 = vld [vmem:[#allocation2 + $0x188] sm:$0xff] }
  0x73   : > { %2275 = vrot.lane.b32.xlu0 %v3168_v10, %s2832_s30  ;;  %v404_v10 = vld [vmem:[#allocation2 + $0x180] sm:$0xff] }
  0x74   : > { %v3296_v54 = vpack.i.bf16 %v405_v3, %v404_v10 }
  0x75   : > { %2285 = vrot.lane.b32.xlu2 %v2284_v16, %s2833_s4 }
  0x76   : > { %4192 = vst [vmem:[#allocation23_spill] sm:$0xff] %v3296_v54 }
  0x77   : > { %2280 = vrot.lane.b32.xlu1 %v3174_v17, %s2832_s30 }
  0x7b   : > { %2290 = vrot.lane.b32.xlu0 %v3186_v26, %s2833_s4 }
  0x7d   : > { %2300 = vrot.lane.b32.xlu2 %v3195_v35, %s2833_s4  ;;  %v3267_v35 = vld [vmem:[#allocation2 + $0x140] sm:$0xff] }
  0x7f   : > { %2295 = vrot.lane.b32.xlu1 %v3201_v36, %s2833_s4  ;;  %v2146_v46 = vpop.permute.xlu2 %2145 }
  0x80   : > { %v2148_v0 = vunpack.i.h.bf16 %v2146_v46  ;;  %v2147_v48 = vunpack.i.l.bf16 %v2146_v46 }
  0x82   : > { %v3222_v56 = vsel %vm169_vm0, %v380_v22, %v2147_v48  ;;  %v3225_v58 = vsel %vm169_vm0, %v381_v24, %v2148_v0  ;;  %v3243_v24 = vld [vmem:[#allocation2 + $0xd8] sm:$0xff] }
  0x83   : > { %2305 = vrot.lane.b32.xlu0 %v3211_v47, %s2833_s4  ;;  %v3261_v48 = vpack.i.bf16 %v3245_v25, %v3243_v24  ;;  %v3273_v47 = vld [vmem:[#allocation2 + $0x128] sm:$0xff] }
  0x85   : > { %2315 = vrot.lane.b32.xlu2 %v3219_v55, %s2833_s4  ;;  %4191 = vst [vmem:[#allocation22_spill] sm:$0xff] %v3261_v48  ;;  %v395_v55 = vld [vmem:[#allocation2 + $0x110] sm:$0xff] }
  0x87   : > { %2310 = vrot.lane.b32.xlu1 %v3231_v59, %s2833_s4  ;;  %v2151_v12 = vpop.permute.xlu2 %2150  ;;  %v3265_v59 = vld [vmem:[#allocation2 + $0x138] sm:$0xff] }
  0x88   : > { %v2153_v16 = vunpack.i.h.bf16 %v2151_v12  ;;  %v2152_v22 = vunpack.i.l.bf16 %v2151_v12  ;;  %v394_v12 = vld [vmem:[#allocation2 + $0x108] sm:$0xff]  ;;  %v2344_v36 = vpack.i.bf16 %v3267_v35, %v3265_v59 }
  0x8a   : > { %v3252_v46 = vsel %vm169_vm0, %v383_v39, %v2153_v16  ;;  %v3255_v0 = vsel %vm169_vm0, %v382_v37, %v2152_v22  ;;  %v2334_v39 = vpack.i.bf16 %v395_v55, %v394_v12 }
  0x8b   : > { %2320 = vrot.lane.b32.xlu0 %v3241_v13, %s2833_s4  ;;  %v3271_v13 = vld [vmem:[#allocation2 + $0x120] sm:$0xff] }
  0x8d   : > { %2330 = vrot.lane.b32.xlu2 %v3249_v27, %s2833_s4 }
  0x8f   : > { %2325 = vrot.lane.b32.xlu1 %v3261_v48, %s2833_s4  ;;  %v2166_v37 = vpop.permute.xlu2 %2165  ;;  %v400_v48 = vld [vmem:[#allocation2 + $0x150] sm:$0xff] }
  0x90   : > { %v2168_v16 = vunpack.i.h.bf16 %v2166_v37  ;;  %v2167_v22 = vunpack.i.l.bf16 %v2166_v37  ;;  %v2339_v37 = vpack.i.bf16 %v3273_v47, %v3271_v13 }
  0x92   : > { %v3278_v27 = vsel %vm169_vm0, %v389_v63, %v2168_v16  ;;  %v3281_v26 = vsel %vm169_vm0, %v388_v62, %v2167_v22  ;;  %v3283_v17 = vpop.permute.xlu0 %2125  ;;  %v2349_v16 = vpack.i.bf16 %v401_v1, %v400_v48  ;;  %v3290_v22 = vld [vmem:[#allocation2 + $0x168] sm:$0xff] }
  0x93   : > { %2335 = vrot.lane.b32.xlu0 %v2334_v39, %s2833_s4 }
  0x95   : > { %2345 = vrot.lane.b32.xlu2 %v2344_v36, %s2833_s4 }
  0x97   : > { %2340 = vrot.lane.b32.xlu1 %v2339_v37, %s2833_s4  ;;  %v2181_v63 = vpop.permute.xlu2 %2180 }
  0x98   : > { %v2183_v53 = vunpack.i.h.bf16 %v2181_v63  ;;  %v2182_v62 = vunpack.i.l.bf16 %v2181_v63  ;;  %v3307_v63 = vpack.i.bf16 %v3292_v61, %v3290_v22 }
  0x99   : > { %v3294_v39 = vpop.permute.xlu1 %2135 }
  0x9a   : > { %v3299_v44 = vsel %vm169_vm0, %v395_v55, %v2183_v53  ;;  %v3302_v36 = vsel %vm169_vm0, %v394_v12, %v2182_v62  ;;  %4194 = vst [vmem:[#allocation25_spill] sm:$0xff] %v3307_v63 }
  0x9b   : > { %4193 = vst [vmem:[#allocation24_spill] sm:$0xff] %v3302_v36  ;;  %2350 = vrot.lane.b32.xlu0 %v2349_v16, %s2833_s4  ;;  %v2131_v37 = vpop.permute.xlu0 %2130 }
  0x9c   : > { %v2132_v36 = vunpack.i.l.bf16 %v2131_v37 }
  0x9d   : > { %2360 = vrot.lane.b32.xlu2 %v3296_v54, %s2833_s4  ;;  %v2133_v54 = vunpack.i.h.bf16 %v2131_v37 }
  0x9f   : > { %2355 = vrot.lane.b32.xlu1 %v3307_v63, %s2833_s4  ;;  %v2196_v3 = vpop.permute.xlu2 %2195 }
  0xa0   : > { %v2198_v10 = vunpack.i.h.bf16 %v2196_v3  ;;  %v2197_v53 = vunpack.i.l.bf16 %v2196_v3 }
  0xa1   : > { %v3313_v55 = vpop.permute.xlu1 %2140 }
  0xa2   : > { %v3316_v12 = vsel %vm169_vm0, %v401_v1, %v2198_v10  ;;  %v3319_v16 = vsel %vm169_vm0, %v400_v48, %v2197_v53  ;;  %v1593_v48 = vsel %vm169_vm0, %v3162_v8, %v2132_v36 }
  0xa3   : > { %2365 = vrot.lane.b32.xlu0 %v2964_v28, %s2834_s5  ;;  %v3323_v62 = vpop.permute.xlu0 %2155  ;;  %v1594_v28 = vsel %vm169_vm0, %v3164_v9, %v2133_v54 }
  0xa5   : > { %2375 = vrot.lane.b32.xlu2 %v2978_v38, %s2834_s5 }
  0xa7   : > { %2370 = vrot.lane.b32.xlu1 %v2956_v23, %s2834_s5  ;;  %v2211_v1 = vpop.permute.xlu2 %2210 }
  0xa8   : > { %v2213_v3 = vunpack.i.h.bf16 %v2211_v1  ;;  %v2212_v10 = vunpack.i.l.bf16 %v2211_v1 }
  0xa9   : > { %v2161_v53 = vpop.permute.xlu1 %2160 }
  0xaa   : > { %v3334_v63 = vsel %vm1623_vm3, %v1593_v48, %v2212_v10  ;;  %v3337_v37 = vsel %vm1623_vm3, %v1594_v28, %v2213_v3  ;;  %v2163_v10 = vunpack.i.h.bf16 %v2161_v53 }
  0xab   : > { %2380 = vrot.lane.b32.xlu0 %v2948_v18, %s2834_s5  ;;  %v3341_v23 = vpop.permute.xlu0 %2170 }
  0xad   : > { %2390 = vrot.lane.b32.xlu2 %v2986_v43, %s2834_s5 }
  0xaf   : > { %2385 = vrot.lane.b32.xlu1 %v2972_v33, %s2834_s5  ;;  %v2226_v38 = vpop.permute.xlu2 %2225  ;;  %v2162_v33 = vunpack.i.l.bf16 %v2161_v53  ;;  %v1606_v53 = vsel %vm169_vm0, %v3207_v42, %v2163_v10 }
  0xb0   : > { %v2228_v54 = vunpack.i.h.bf16 %v2226_v38  ;;  %v2227_v8 = vunpack.i.l.bf16 %v2226_v38 }
  0xb1   : > { %v2176_v9 = vpop.permute.xlu1 %2175 }
  0xb2   : > { %v3349_v36 = vsel %vm1623_vm3, %v3225_v58, %v2228_v54  ;;  %v3353_v1 = vsel %vm1623_vm3, %v3222_v56, %v2227_v8 }
  0xb3   : > { %2395 = vrot.lane.b32.xlu0 %v3006_v57, %s2834_s5  ;;  %v2186_v18 = vpop.permute.xlu0 %2185 }
  0xb4   : > { %v2188_v43 = vunpack.i.h.bf16 %v2186_v18  ;;  %v2187_v3 = vunpack.i.l.bf16 %v2186_v18  ;;  %v2178_v18 = vunpack.i.h.bf16 %v2176_v9 }
  0xb5   : > { %2405 = vrot.lane.b32.xlu2 %v3014_v60, %s2834_s5  ;;  %v1605_v60 = vsel %vm169_vm0, %v3205_v41, %v2162_v33  ;;  %v278_v33 = vld [vmem:[#allocation2] sm:$0xff] }
  0xb6   : > { %v3361_v48 = vsel %vm169_vm0, %v3273_v47, %v2188_v43  ;;  %v3365_v58 = vsel %vm169_vm0, %v3271_v13, %v2187_v3  ;;  %v2177_v43 = vunpack.i.l.bf16 %v2176_v9  ;;  %v2128_v3 = vunpack.i.h.bf16 %v3283_v17  ;;  %v279_v9 = vld [vmem:[#allocation2 + $0x8] sm:$0xff] }
  0xb7   : > { %2400 = vrot.lane.b32.xlu1 %v3000_v52, %s2834_s5  ;;  %v2241_v57 = vpop.permute.xlu2 %2240 }
  0xb8   : > { %v2243_v56 = vunpack.i.h.bf16 %v2241_v57  ;;  %v2242_v28 = vunpack.i.l.bf16 %v2241_v57 }
  0xb9   : > { %v2191_v38 = vpop.permute.xlu1 %2190 }
  0xba   : > { %v3374_v47 = vsel %vm1623_vm3, %v1606_v53, %v2243_v56  ;;  %v3377_v54 = vsel %vm1623_vm3, %v1605_v60, %v2242_v28  ;;  %v2137_v56 = vunpack.i.l.bf16 %v3294_v39 }
  0xbb   : > { %2410 = vrot.lane.b32.xlu0 %v3031_v5, %s2834_s5  ;;  %v2201_v52 = vpop.permute.xlu0 %2200  ;;  %v2127_v5 = vunpack.i.l.bf16 %v3283_v17 }
  0xbc   : > { %v2203_v13 = vunpack.i.h.bf16 %v2201_v52  ;;  %v2202_v8 = vunpack.i.l.bf16 %v2201_v52  ;;  %v1592_v52 = vsel %vm169_vm0, %v279_v9, %v2128_v3  ;;  %v1595_v3 = vsel %vm169_vm0, %v3176_v19, %v2137_v56 }
  0xbd   : > { %2420 = vrot.lane.b32.xlu2 %v3039_v6, %s2834_s5  ;;  %v2143_v9 = vunpack.i.h.bf16 %v3313_v55 }
  0xbe   : > { %v3385_v41 = vsel %vm169_vm0, %v3292_v61, %v2203_v13  ;;  %v3389_v42 = vsel %vm169_vm0, %v3290_v22, %v2202_v8  ;;  %v1612_v61 = vsel %vm169_vm0, %v3237_v7, %v2178_v18  ;;  %v1611_v22 = vsel %vm169_vm0, %v3235_v4, %v2177_v43  ;;  %v436_v18 = vld [vmem:[#allocation2 + $0x181] sm:$0xff]  ;;  %v437_v43 = vld [vmem:[#allocation2 + $0x189] sm:$0xff] }
  0xbf   : > { %2415 = vrot.lane.b32.xlu1 %v3025_v2, %s2834_s5  ;;  %v2256_v10 = vpop.permute.xlu2 %2255  ;;  %v1591_v13 = vsel %vm169_vm0, %v278_v33, %v2127_v5  ;;  %v2138_v8 = vunpack.i.h.bf16 %v3294_v39  ;;  %v2142_v33 = vunpack.i.l.bf16 %v3313_v55 }
  0xc0   : > { %v2258_v57 = vunpack.i.h.bf16 %v2256_v10  ;;  %v2257_v6 = vunpack.i.l.bf16 %v2256_v10  ;;  %v2193_v10 = vunpack.i.h.bf16 %v2191_v38 }
  0xc1   : > { %v2206_v28 = vpop.permute.xlu1 %2205 }
  0xc2   : > { %v2208_v53 = vunpack.i.h.bf16 %v2206_v28  ;;  %v2207_v60 = vunpack.i.l.bf16 %v2206_v28  ;;  %v3401_v17 = vsel %vm1623_vm3, %v1612_v61, %v2258_v57  ;;  %v3404_v2 = vsel %vm1623_vm3, %v1611_v22, %v2257_v6 }
  0xc3   : > { %2425 = vrot.lane.b32.xlu0 %v3059_v14, %s2834_s5  ;;  %v2192_v57 = vunpack.i.l.bf16 %v2191_v38  ;;  %v1596_v14 = vsel %vm169_vm0, %v3178_v20, %v2138_v8  ;;  %v3423_v6 = vpack.i.bf16 %v437_v43, %v436_v18  ;;  %v1618_v20 = vsel %vm169_vm0, %v3267_v35, %v2193_v10 }
  0xc4   : > { %v1625_v4 = vsel %vm1623_vm3, %v1592_v52, %v2208_v53  ;;  %v1624_v7 = vsel %vm1623_vm3, %v1591_v13, %v2207_v60  ;;  %v1598_v13 = vsel %vm169_vm0, %v3192_v31, %v2143_v9  ;;  %v1597_v8 = vsel %vm169_vm0, %v3190_v30, %v2142_v33 }
  0xc5   : > { %v2216_v61 = vpop.permute.xlu0 %2215  ;;  %2435 = vrot.lane.b32.xlu2 %v3067_v15, %s2834_s5  ;;  %v1617_v55 = vsel %vm169_vm0, %v3265_v59, %v2192_v57  ;;  %v2158_v57 = vunpack.i.h.bf16 %v3323_v62  ;;  %v2157_v31 = vunpack.i.l.bf16 %v3323_v62 }
  0xc6   : > { %v2218_v5 = vunpack.i.h.bf16 %v2216_v61  ;;  %v2217_v39 = vunpack.i.l.bf16 %v2216_v61 }
  0xc7   : > { %2430 = vrot.lane.b32.xlu1 %v3053_v11, %s2834_s5  ;;  %v2271_v38 = vpop.permute.xlu2 %2270  ;;  %v1604_v33 = vsel %vm169_vm0, %v3215_v51, %v2158_v57  ;;  %v2172_v51 = vunpack.i.l.bf16 %v3341_v23 }
  0xc8   : > { %v3426_v15 = vsel %vm1623_vm3, %v1596_v14, %v2218_v5  ;;  %v3429_v19 = vsel %vm1623_vm3, %v1595_v3, %v2217_v39  ;;  %v2273_v56 = vunpack.i.h.bf16 %v2271_v38  ;;  %v2272_v22 = vunpack.i.l.bf16 %v2271_v38 }
  0xc9   : > { %v2221_v28 = vpop.permute.xlu1 %2220 }
  0xca   : > { %v2223_v53 = vunpack.i.h.bf16 %v2221_v28  ;;  %v2222_v11 = vunpack.i.l.bf16 %v2221_v28  ;;  %v3436_v60 = vsel %vm1623_vm3, %v1618_v20, %v2273_v56  ;;  %v3439_v52 = vsel %vm1623_vm3, %v1617_v55, %v2272_v22 }
  0xcb   : > { %2440 = vrot.lane.b32.xlu0 %v3423_v6, %s2834_s5  ;;  %v2173_v22 = vunpack.i.h.bf16 %v3341_v23  ;;  %s1987_s5 = scalar_lea.hbm %s4153_s3, %s2073_s28 }
  0xcc   : > { %v1630_v35 = vsel %vm1623_vm3, %v1597_v8, %v2222_v11  ;;  %v1631_v59 = vsel %vm1623_vm3, %v1598_v13, %v2223_v53 }
  0xcd   : > { %v2231_v18 = vpop.permute.xlu0 %2230  ;;  %2450 = vrot.lane.b32.xlu2 %v3104_v29, %s2835_s6 }
  0xce   : > { %v2233_v43 = vunpack.i.h.bf16 %v2231_v18  ;;  %v2232_v10 = vunpack.i.l.bf16 %v2231_v18 }
  0xcf   : > { %2445 = vrot.lane.b32.xlu1 %v3081_v21, %s2835_s6  ;;  %v2286_v30 = vpop.permute.xlu2 %2285 }
  0xd0   : > { %v3457_v61 = vsel %vm1623_vm3, %v3252_v46, %v2233_v43  ;;  %v3461_v3 = vsel %vm1623_vm3, %v3255_v0, %v2232_v10  ;;  %v2288_v29 = vunpack.i.h.bf16 %v2286_v30  ;;  %v2287_v5 = vunpack.i.l.bf16 %v2286_v30  ;;  %v4195_v43 = vld [vmem:[#allocation6_spill] sm:$0xff]  ;;  %v4196_v10 = vld [vmem:[#allocation24_spill] sm:$0xff] }
  0xd1   : > { %v2236_v39 = vpop.permute.xlu1 %2235  ;;  %v1603_v46 = vsel %vm169_vm0, %v3213_v50, %v2157_v31 }
  0xd2   : > { %v2238_v14 = vunpack.i.h.bf16 %v2236_v39  ;;  %v2237_v9 = vunpack.i.l.bf16 %v2236_v39  ;;  %v3464_v62 = vsel %vm1656_vm4, %v1625_v4, %v2288_v29  ;;  %v3467_v21 = vsel %vm1656_vm4, %v1624_v7, %v2287_v5 }
  0xd3   : > { %2455 = vrot.lane.b32.xlu0 %v3112_v32, %s2835_s6 }
  0xd4   : > { %v1636_v0 = vsel %vm1623_vm3, %v1603_v46, %v2237_v9  ;;  %v1637_v38 = vsel %vm1623_vm3, %v1604_v33, %v2238_v14  ;;  %v4197_v14 = vld [vmem:[#allocation8_spill] sm:$0xff]  ;;  %v4198_v46 = vld [vmem:[#allocation9_spill] sm:$0xff] }
  0xd5   : > { %v2246_v56 = vpop.permute.xlu0 %2245  ;;  %2465 = vrot.lane.b32.xlu2 %v3128_v40, %s2835_s6 }
  0xd6   : > { %v2248_v4 = vunpack.i.h.bf16 %v2246_v56  ;;  %v2247_v7 = vunpack.i.l.bf16 %v2246_v56 }
  0xd7   : > { %2460 = vrot.lane.b32.xlu1 %v3114_v34, %s2835_s6  ;;  %v2301_v50 = vpop.permute.xlu2 %2300  ;;  %v1610_v34 = vsel %vm169_vm0, %v3245_v25, %v2173_v22 }
  0xd8   : > { %v3485_v32 = vsel %vm1623_vm3, %v3278_v27, %v2248_v4  ;;  %v3489_v20 = vsel %vm1623_vm3, %v3281_v26, %v2247_v7  ;;  %v2303_v55 = vunpack.i.h.bf16 %v2301_v50  ;;  %v2302_v40 = vunpack.i.l.bf16 %v2301_v50 }
  0xd9   : > { %v2251_v28 = vpop.permute.xlu1 %2250  ;;  %v1609_v27 = vsel %vm169_vm0, %v3243_v24, %v2172_v51 }
  0xda   : > { %v2253_v53 = vunpack.i.h.bf16 %v2251_v28  ;;  %v2252_v11 = vunpack.i.l.bf16 %v2251_v28  ;;  %v3492_v13 = vsel %vm1656_vm4, %v1631_v59, %v2303_v55  ;;  %v3495_v23 = vsel %vm1656_vm4, %v1630_v35, %v2302_v40 }
  0xdb   : > { %2470 = vrot.lane.b32.xlu0 %v3134_v45, %s2835_s6 }
  0xdc   : > { %v1642_v26 = vsel %vm1623_vm3, %v1609_v27, %v2252_v11  ;;  %v1643_v8 = vsel %vm1623_vm3, %v1610_v34, %v2253_v53  ;;  %v4200_v53 = vld [vmem:[#allocation11_spill] sm:$0xff]  ;;  %v4201_v34 = vld [vmem:[#allocation12_spill] sm:$0xff] }
  0xdd   : > { %v2261_v18 = vpop.permute.xlu0 %2260  ;;  %2480 = vrot.lane.b32.xlu2 %v3140_v49, %s2835_s6 }
  0xde   : > { %v2263_v59 = vunpack.i.h.bf16 %v2261_v18  ;;  %v2262_v35 = vunpack.i.l.bf16 %v2261_v18 }
  0xdf   : > { %2475 = vrot.lane.b32.xlu1 %v4195_v43, %s2835_s6  ;;  %v2316_v25 = vpop.permute.xlu2 %2315  ;;  %v468_v43 = vld [vmem:[#allocation2 + $0x182] sm:$0xff] }
  0xe0   : > { %v3511_v24 = vsel %vm1623_vm3, %v3299_v44, %v2263_v59  ;;  %v3515_v45 = vsel %vm1623_vm3, %v4196_v10, %v2262_v35  ;;  %v2318_v57 = vunpack.i.h.bf16 %v2316_v25  ;;  %v2317_v31 = vunpack.i.l.bf16 %v2316_v25  ;;  %v469_v25 = vld [vmem:[#allocation2 + $0x18a] sm:$0xff] }
  0xe1   : > { %v2266_v30 = vpop.permute.xlu1 %2265 }
  0xe2   : > { %v2268_v29 = vunpack.i.h.bf16 %v2266_v30  ;;  %v2267_v5 = vunpack.i.l.bf16 %v2266_v30  ;;  %v3518_v49 = vsel %vm1656_vm4, %v1636_v0, %v2317_v31  ;;  %v3521_v39 = vsel %vm1656_vm4, %v1637_v38, %v2318_v57  ;;  %v4199_v0 = vld [vmem:[#allocation7_spill] sm:$0xff] }
  0xe3   : > { %2485 = vrot.lane.b32.xlu0 %v4197_v14, %s2835_s6 }
  0xe4   : > { %v1648_v44 = vsel %vm1623_vm3, %v3365_v58, %v2267_v5  ;;  %v1649_v9 = vsel %vm1623_vm3, %v3361_v48, %v2268_v29  ;;  %v3573_v5 = vpack.i.bf16 %v469_v25, %v468_v43 }
  0xe5   : > { %v2276_v33 = vpop.permute.xlu0 %2275  ;;  %2495 = vrot.lane.b32.xlu2 %v4198_v46, %s2835_s6  ;;  %v4204_v46 = vld [vmem:[#allocation14_spill] sm:$0xff] }
  0xe6   : > { %v2278_v56 = vunpack.i.h.bf16 %v2276_v33  ;;  %v2277_v4 = vunpack.i.l.bf16 %v2276_v33 }
  0xe7   : > { %2490 = vrot.lane.b32.xlu1 %v4199_v0, %s2835_s6  ;;  %v2331_v38 = vpop.permute.xlu2 %2330 }
  0xe8   : > { %v3535_v7 = vsel %vm1623_vm3, %v3316_v12, %v2278_v56  ;;  %v3539_v58 = vsel %vm1623_vm3, %v3319_v16, %v2277_v4  ;;  %v2333_v22 = vunpack.i.h.bf16 %v2331_v38  ;;  %v2332_v48 = vunpack.i.l.bf16 %v2331_v38 }
  0xe9   : > { %v2281_v51 = vpop.permute.xlu1 %2280 }
  0xea   : > { %v2283_v50 = vunpack.i.h.bf16 %v2281_v51  ;;  %v2282_v55 = vunpack.i.l.bf16 %v2281_v51  ;;  %v3542_v40 = vsel %vm1656_vm4, %v1642_v26, %v2332_v48  ;;  %v3545_v28 = vsel %vm1656_vm4, %v1643_v8, %v2333_v22  ;;  %v4202_v26 = vld [vmem:[#allocation10_spill] sm:$0xff] }
  0xeb   : > { %2500 = vrot.lane.b32.xlu0 %v4200_v53, %s2835_s6 }
  0xec   : > { %v1654_v12 = vsel %vm1623_vm3, %v3389_v42, %v2282_v55  ;;  %v1655_v16 = vsel %vm1623_vm3, %v3385_v41, %v2283_v50  ;;  %v4205_v55 = vld [vmem:[#allocation16_spill] sm:$0xff] }
  0xed   : > { %v2291_v11 = vpop.permute.xlu0 %2290  ;;  %2510 = vrot.lane.b32.xlu2 %v4201_v34, %s2835_s6 }
  0xee   : > { %v2293_v27 = vunpack.i.h.bf16 %v2291_v11  ;;  %v2292_v18 = vunpack.i.l.bf16 %v2291_v11  ;;  %v4206_v11 = vld [vmem:[#allocation17_spill] sm:$0xff] }
  0xef   : > { %2505 = vrot.lane.b32.xlu1 %v4202_v26, %s2835_s6  ;;  %v2346_v8 = vpop.permute.xlu2 %2345 }
  0xf0   : > { %v3559_v59 = vsel %vm1656_vm4, %v3334_v63, %v2292_v18  ;;  %v3563_v42 = vsel %vm1656_vm4, %v3337_v37, %v2293_v27  ;;  %v2348_v35 = vunpack.i.h.bf16 %v2346_v8  ;;  %v2347_v41 = vunpack.i.l.bf16 %v2346_v8  ;;  %v4203_v63 = vld [vmem:[#allocation13_spill] sm:$0xff] }
  0xf1   : > { %v2296_v10 = vpop.permute.xlu1 %2295 }
  0xf2   : > { %v2298_v57 = vunpack.i.h.bf16 %v2296_v10  ;;  %v2297_v31 = vunpack.i.l.bf16 %v2296_v10  ;;  %v3566_v30 = vsel %vm1656_vm4, %v1648_v44, %v2347_v41  ;;  %v3569_v29 = vsel %vm1656_vm4, %v1649_v9, %v2348_v35  ;;  %v4208_v10 = vld [vmem:[#allocation19_spill] sm:$0xff] }
  0xf3   : > { %2515 = vrot.lane.b32.xlu0 %v4203_v63, %s2835_s6 }
  0xf4   : > { %v1661_v37 = vsel %vm1656_vm4, %v3429_v19, %v2297_v31  ;;  %v1662_v14 = vsel %vm1656_vm4, %v3426_v15, %v2298_v57  ;;  %v4209_v31 = vld [vmem:[#allocation20_spill] sm:$0xff] }
  0xf5   : > { %v2306_v33 = vpop.permute.xlu0 %2305  ;;  %2525 = vrot.lane.b32.xlu2 %v4204_v46, %s2836_s7  ;;  %v502_v46 = vld [vmem:[#allocation2 + $0x1a0] sm:$0xff] }
  0xf6   : > { %v2308_v44 = vunpack.i.h.bf16 %v2306_v33  ;;  %v2307_v56 = vunpack.i.l.bf16 %v2306_v33 }
  0xf7   : > { %2520 = vrot.lane.b32.xlu1 %v3573_v5, %s2835_s6  ;;  %v2361_v9 = vpop.permute.xlu2 %2360  ;;  %s1988_s6 = sshll.u32 %s163_s27, 4  ;;  %s1989_s6 = int_to_ptr.vmem [resolvable:$true] %s1988_s6 }
  0xf8   : > { %v3585_v4 = vsel %vm1656_vm4, %v3349_v36, %v2308_v44  ;;  %v3589_v19 = vsel %vm1656_vm4, %v3353_v1, %v2307_v56  ;;  %v2363_v15 = vunpack.i.h.bf16 %v2361_v9  ;;  %v2362_v0 = vunpack.i.l.bf16 %v2361_v9 }
  0xf9   : > { %v2311_v38 = vpop.permute.xlu1 %2310 }
  0xfa   : > { %v2313_v22 = vunpack.i.h.bf16 %v2311_v38  ;;  %v2312_v48 = vunpack.i.l.bf16 %v2311_v38  ;;  %v3592_v51 = vsel %vm1656_vm4, %v1654_v12, %v2362_v0  ;;  %v3595_v50 = vsel %vm1656_vm4, %v1655_v16, %v2363_v15  ;;  %v4207_v12 = vld [vmem:[#allocation15_spill] sm:$0xff] }
  0xfb   : > { %2530 = vrot.lane.b32.xlu0 %v4205_v55, %s2836_s7 }
  0xfc   : > { %v1667_v36 = vsel %vm1656_vm4, %v3461_v3, %v2312_v48  ;;  %v1668_v1 = vsel %vm1656_vm4, %v3457_v61, %v2313_v22 }
  0xfd   : > { %v2321_v53 = vpop.permute.xlu0 %2320  ;;  %2540 = vrot.lane.b32.xlu2 %v4206_v11, %s2836_s7  ;;  %v517_v11 = vld [vmem:[#allocation2 + $0xd9] sm:$0xff] }
  0xfe   : > { %v2323_v34 = vunpack.i.h.bf16 %v2321_v53  ;;  %v2322_v27 = vunpack.i.l.bf16 %v2321_v53  ;;  %v4211_v53 = vld [vmem:[#allocation22_spill] sm:$0xff] }
  0xff   : > { %2535 = vrot.lane.b32.xlu1 %v4207_v12, %s2836_s7  ;;  %v2376_v16 = vpop.permute.xlu2 %2375 }
 0x100   : > { %v3609_v18 = vsel %vm1656_vm4, %v3374_v47, %v2323_v34  ;;  %v3613_v3 = vsel %vm1656_vm4, %v3377_v54, %v2322_v27  ;;  %v2378_v61 = vunpack.i.h.bf16 %v2376_v16  ;;  %v2377_v26 = vunpack.i.l.bf16 %v2376_v16  ;;  %v518_v34 = vld [vmem:[#allocation2 + $0xe1] sm:$0xff] }
 0x101   : > { %v2326_v8 = vpop.permute.xlu1 %2325  ;;  %v549_v16 = vld [vmem:[#allocation2 + $0xda] sm:$0xff] }
 0x102   : > { %v2328_v35 = vunpack.i.h.bf16 %v2326_v8  ;;  %v2327_v41 = vunpack.i.l.bf16 %v2326_v8  ;;  %v3616_v43 = vsel %vm1689_vm5, %v1661_v37, %v2377_v26  ;;  %v3619_v25 = vsel %vm1689_vm5, %v1662_v14, %v2378_v61  ;;  %v501_v37 = vld [vmem:[#allocation2 + $0x198] sm:$0xff]  ;;  %v4210_v14 = vld [vmem:[#allocation18_spill] sm:$0xff]  ;;  %v550_v61 = vld [vmem:[#allocation2 + $0xe2] sm:$0xff] }
 0x103   : > { %2545 = vrot.lane.b32.xlu0 %v4208_v10, %s2836_s7  ;;  %v2569_v0 = vpack.i.bf16 %v502_v46, %v501_v37  ;;  %v2574_v8 = vpack.i.bf16 %v518_v34, %v517_v11  ;;  %v533_v10 = vld [vmem:[#allocation2 + $0x199] sm:$0xff] }
 0x104   : > { %v1673_v47 = vsel %vm1656_vm4, %v3489_v20, %v2327_v41  ;;  %v1674_v54 = vsel %vm1656_vm4, %v3485_v32, %v2328_v35 }
 0x105   : > { %v2336_v57 = vpop.permute.xlu0 %2335  ;;  %2555 = vrot.lane.b32.xlu2 %v4209_v31, %s2836_s7 }
 0x106   : > { %v2338_v63 = vunpack.i.h.bf16 %v2336_v57  ;;  %v2337_v33 = vunpack.i.l.bf16 %v2336_v57  ;;  %v534_v57 = vld [vmem:[#allocation2 + $0x1a1] sm:$0xff] }
 0x107   : > { %2550 = vrot.lane.b32.xlu1 %v4210_v14, %s2836_s7  ;;  %v2391_v44 = vpop.permute.xlu2 %2390 }
 0x108   : > { %v3633_v56 = vsel %vm1656_vm4, %v3401_v17, %v2338_v63  ;;  %v3637_v20 = vsel %vm1656_vm4, %v3404_v2, %v2337_v33  ;;  %v2393_v32 = vunpack.i.h.bf16 %v2391_v44  ;;  %v2392_v9 = vunpack.i.l.bf16 %v2391_v44 }
 0x109   : > { %v2341_v15 = vpop.permute.xlu1 %2340  ;;  %v2584_v63 = vpack.i.bf16 %v550_v61, %v549_v16 }
 0x10a   : > { %v2343_v38 = vunpack.i.h.bf16 %v2341_v15  ;;  %v2342_v22 = vunpack.i.l.bf16 %v2341_v15  ;;  %v3640_v48 = vsel %vm1689_vm5, %v1667_v36, %v2392_v9  ;;  %v3643_v55 = vsel %vm1689_vm5, %v1668_v1, %v2393_v32  ;;  %v4212_v1 = vld [vmem:[#allocation21_spill] sm:$0xff]  ;;  %v565_v32 = vld [vmem:[#allocation2 + $0x19a] sm:$0xff] }
 0x10b   : > { %2560 = vrot.lane.b32.xlu0 %v4211_v53, %s2836_s7  ;;  %v566_v9 = vld [vmem:[#allocation2 + $0x1a2] sm:$0xff] }
 0x10c   : > { %v1679_v17 = vsel %vm1656_vm4, %v3515_v45, %v2342_v22  ;;  %v1680_v2 = vsel %vm1656_vm4, %v3511_v24, %v2343_v38  ;;  %v516_v38 = vld [vmem:[#allocation2 + $0xc9] sm:$0xff]  ;;  %v2589_v53 = vpack.i.bf16 %v566_v9, %v565_v32 }
 0x10d   : > { %v2351_v27 = vpop.permute.xlu0 %2350  ;;  %2570 = vrot.lane.b32.xlu2 %v2569_v0, %s2836_s7 }
 0x10e   : > { %v2353_v12 = vunpack.i.h.bf16 %v2351_v27  ;;  %v2352_v36 = vunpack.i.l.bf16 %v2351_v27 }
 0x10f   : > { %2565 = vrot.lane.b32.xlu1 %v4212_v1, %s2836_s7  ;;  %v2406_v26 = vpop.permute.xlu2 %2405 }
 0x110   : > { %v3656_v45 = vsel %vm1656_vm4, %v3436_v60, %v2353_v12  ;;  %v3660_v24 = vsel %vm1656_vm4, %v3439_v52, %v2352_v36  ;;  %v2408_v35 = vunpack.i.h.bf16 %v2406_v26  ;;  %v2407_v41 = vunpack.i.l.bf16 %v2406_v26 }
 0x111   : > { %v2356_v31 = vpop.permute.xlu1 %2355  ;;  %v2579_v60 = vpack.i.bf16 %v534_v57, %v533_v10 }
 0x112   : > { %v2358_v33 = vunpack.i.h.bf16 %v2356_v31  ;;  %v2357_v37 = vunpack.i.l.bf16 %v2356_v31  ;;  %v3663_v46 = vsel %vm1689_vm5, %v1673_v47, %v2407_v41  ;;  %v3666_v14 = vsel %vm1689_vm5, %v1674_v54, %v2408_v35  ;;  %v515_v54 = vld [vmem:[#allocation2 + $0xc1] sm:$0xff]  ;;  %v4213_v41 = vld [vmem:[#allocation23_spill] sm:$0xff]  ;;  %v548_v31 = vld [vmem:[#allocation2 + $0xca] sm:$0xff] }
 0x113   : > { %2575 = vrot.lane.b32.xlu0 %v2574_v8, %s2837_s8  ;;  %v2599_v12 = vpack.i.bf16 %v516_v38, %v515_v54  ;;  %v530_v54 = vld [vmem:[#allocation2 + $0x171] sm:$0xff] }
 0x114   : > { %v1685_v52 = vsel %vm1656_vm4, %v3539_v58, %v2357_v37  ;;  %v1686_v44 = vsel %vm1656_vm4, %v3535_v7, %v2358_v33 }
 0x115   : > { %v2366_v15 = vpop.permute.xlu0 %2365  ;;  %2585 = vrot.lane.b32.xlu2 %v2584_v63, %s2838_s9 }
 0x116   : > { %v2368_v47 = vunpack.i.h.bf16 %v2366_v15  ;;  %v2367_v0 = vunpack.i.l.bf16 %v2366_v15 }
 0x117   : > { %2580 = vrot.lane.b32.xlu1 %v2579_v60, %s2837_s8  ;;  %v2421_v22 = vpop.permute.xlu2 %2420 }
 0x118   : > { %v3677_v58 = vsel %vm1689_vm5, %v3464_v62, %v2368_v47  ;;  %v3681_v7 = vsel %vm1689_vm5, %v3467_v21, %v2367_v0  ;;  %v2423_v11 = vunpack.i.h.bf16 %v2421_v22  ;;  %v2422_v34 = vunpack.i.l.bf16 %v2421_v22  ;;  %v529_v0 = vld [vmem:[#allocation2 + $0x169] sm:$0xff] }
 0x119   : > { %v2371_v27 = vpop.permute.xlu1 %2370  ;;  %v513_v22 = vld [vmem:[#allocation2 + $0xa9] sm:$0xff] }
 0x11a   : > { %v2373_v36 = vunpack.i.h.bf16 %v2371_v27  ;;  %v2372_v16 = vunpack.i.l.bf16 %v2371_v27  ;;  %v3684_v61 = vsel %vm1689_vm5, %v1679_v17, %v2422_v34  ;;  %v3687_v1 = vsel %vm1689_vm5, %v1680_v2, %v2423_v11 }
 0x11b   : > { %2590 = vrot.lane.b32.xlu0 %v2589_v53, %s2838_s9  ;;  %v2629_v11 = vpack.i.bf16 %v530_v54, %v529_v0 }
 0x11c   : > { %v1692_v62 = vsel %vm1689_vm5, %v3559_v59, %v2372_v16  ;;  %v1693_v21 = vsel %vm1689_vm5, %v3563_v42, %v2373_v36  ;;  %v547_v42 = vld [vmem:[#allocation2 + $0xc2] sm:$0xff] }
 0x11d   : > { %v2381_v26 = vpop.permute.xlu0 %2380  ;;  %2600 = vrot.lane.b32.xlu2 %v2599_v12, %s2837_s8 }
 0x11e   : > { %v2383_v8 = vunpack.i.h.bf16 %v2381_v26  ;;  %v2382_v35 = vunpack.i.l.bf16 %v2381_v26 }
 0x11f   : > { %2595 = vrot.lane.b32.xlu1 %v4213_v41, %s2836_s7  ;;  %v2436_v17 = vpop.permute.xlu2 %2435 }
 0x120   : > { %v3699_v2 = vsel %vm1689_vm5, %v3492_v13, %v2383_v8  ;;  %v3703_v10 = vsel %vm1689_vm5, %v3495_v23, %v2382_v35  ;;  %v2438_v59 = vunpack.i.h.bf16 %v2436_v17  ;;  %v2437_v57 = vunpack.i.l.bf16 %v2436_v17  ;;  %v545_v8 = vld [vmem:[#allocation2 + $0xaa] sm:$0xff]  ;;  %v546_v35 = vld [vmem:[#allocation2 + $0xb2] sm:$0xff] }
 0x121   : > { %v2386_v63 = vpop.permute.xlu1 %2385  ;;  %v2609_v13 = vpack.i.bf16 %v548_v31, %v547_v42  ;;  %v495_v17 = vld [vmem:[#allocation2 + $0x150] sm:$0xff]  ;;  %v2634_v42 = vpack.i.bf16 %v546_v35, %v545_v8 }
 0x122   : > { %v2388_v33 = vunpack.i.h.bf16 %v2386_v63  ;;  %v2387_v37 = vunpack.i.l.bf16 %v2386_v63  ;;  %v3706_v60 = vsel %vm1689_vm5, %v1685_v52, %v2437_v57  ;;  %v3709_v32 = vsel %vm1689_vm5, %v1686_v44, %v2438_v59  ;;  %v496_v59 = vld [vmem:[#allocation2 + $0x158] sm:$0xff] }
 0x123   : > { %2605 = vrot.lane.b32.xlu0 %v3423_v6, %s2837_s8 }
 0x124   : > { %v1698_v23 = vsel %vm1689_vm5, %v3589_v19, %v2387_v37  ;;  %v1699_v9 = vsel %vm1689_vm5, %v3585_v4, %v2388_v33  ;;  %v561_v33 = vld [vmem:[#allocation2 + $0x16a] sm:$0xff]  ;;  %v562_v37 = vld [vmem:[#allocation2 + $0x172] sm:$0xff] }
 0x125   : > { %v2396_v15 = vpop.permute.xlu0 %2395  ;;  %2615 = vrot.lane.b32.xlu2 %v3573_v5, %s2838_s9  ;;  %v514_v5 = vld [vmem:[#allocation2 + $0xb1] sm:$0xff] }
 0x126   : > { %v2398_v47 = vunpack.i.h.bf16 %v2396_v15  ;;  %v2397_v52 = vunpack.i.l.bf16 %v2396_v15  ;;  %v2624_v16 = vpack.i.bf16 %v514_v5, %v513_v22  ;;  %v2644_v15 = vpack.i.bf16 %v496_v59, %v495_v17  ;;  %v559_v17 = vld [vmem:[#allocation2 + $0x152] sm:$0xff]  ;;  %v560_v59 = vld [vmem:[#allocation2 + $0x15a] sm:$0xff] }
 0x127   : > { %2610 = vrot.lane.b32.xlu1 %v2609_v13, %s2838_s9  ;;  %v2451_v44 = vpop.permute.xlu2 %2450 }
 0x128   : > { %v3722_v6 = vsel %vm1689_vm5, %v3518_v49, %v2397_v52  ;;  %v3726_v19 = vsel %vm1689_vm5, %v3521_v39, %v2398_v47  ;;  %v2453_v4 = vunpack.i.h.bf16 %v2451_v44  ;;  %v2452_v38 = vunpack.i.l.bf16 %v2451_v44  ;;  %v4214_v49 = vld [vmem:[#allocation25_spill] sm:$0xff] }
 0x129   : > { %v2401_v53 = vpop.permute.xlu1 %2400 }
 0x12a   : > { %v2403_v34 = vunpack.i.h.bf16 %v2401_v53  ;;  %v2402_v27 = vunpack.i.l.bf16 %v2401_v53  ;;  %v3729_v12 = vsel %vm1722_vm6, %v1692_v62, %v2452_v38  ;;  %v3732_v36 = vsel %vm1722_vm6, %v1693_v21, %v2453_v4  ;;  %v511_v4 = vld [vmem:[#allocation2 + $0x91] sm:$0xff]  ;;  %v512_v38 = vld [vmem:[#allocation2 + $0x99] sm:$0xff] }
 0x12b   : > { %2620 = vrot.lane.b32.xlu0 %v4214_v49, %s2836_s7  ;;  %v543_v53 = vld [vmem:[#allocation2 + $0x92] sm:$0xff] }
 0x12c   : > { %v3738_v39 = vsel %vm1689_vm5, %v3613_v3, %v2402_v27  ;;  %v3742_v26 = vsel %vm1689_vm5, %v3609_v18, %v2403_v34  ;;  %v2649_v34 = vpack.i.bf16 %v512_v38, %v511_v4  ;;  %v527_v27 = vld [vmem:[#allocation2 + $0x151] sm:$0xff]  ;;  %v528_v49 = vld [vmem:[#allocation2 + $0x159] sm:$0xff] }
 0x12d   : > { %v2411_v41 = vpop.permute.xlu0 %2410  ;;  %2630 = vrot.lane.b32.xlu2 %v2629_v11, %s2837_s8  ;;  %v544_v11 = vld [vmem:[#allocation2 + $0x9a] sm:$0xff] }
 0x12e   : > { %v2413_v62 = vunpack.i.h.bf16 %v2411_v41  ;;  %v2412_v21 = vunpack.i.l.bf16 %v2411_v41  ;;  %v2659_v8 = vpack.i.bf16 %v544_v11, %v543_v53  ;;  %v525_v11 = vld [vmem:[#allocation2 + $0x139] sm:$0xff] }
 0x12f   : > { %2625 = vrot.lane.b32.xlu1 %v2624_v16, %s2837_s8  ;;  %v2466_v57 = vpop.permute.xlu2 %2465 }
 0x130   : > { %v3748_v3 = vsel %vm1689_vm5, %v3542_v40, %v2412_v21  ;;  %v3752_v18 = vsel %vm1689_vm5, %v3545_v28, %v2413_v62  ;;  %v2468_v31 = vunpack.i.h.bf16 %v2466_v57  ;;  %v2467_v63 = vunpack.i.l.bf16 %v2466_v57 }
 0x131   : > { %v2416_v13 = vpop.permute.xlu1 %2415  ;;  %v2639_v40 = vpack.i.bf16 %v562_v37, %v561_v33  ;;  %v2654_v62 = vpack.i.bf16 %v528_v49, %v527_v27  ;;  %v2664_v37 = vpack.i.bf16 %v560_v59, %v559_v17  ;;  %v541_v17 = vld [vmem:[#allocation2 + $0x7a] sm:$0xff]  ;;  %v542_v59 = vld [vmem:[#allocation2 + $0x82] sm:$0xff] }
 0x132   : > { %v2418_v47 = vunpack.i.h.bf16 %v2416_v13  ;;  %v2417_v52 = vunpack.i.l.bf16 %v2416_v13  ;;  %v3755_v0 = vsel %vm1722_vm6, %v1698_v23, %v2467_v63  ;;  %v3758_v54 = vsel %vm1722_vm6, %v1699_v9, %v2468_v31  ;;  %v509_v31 = vld [vmem:[#allocation2 + $0x79] sm:$0xff]  ;;  %v510_v63 = vld [vmem:[#allocation2 + $0x81] sm:$0xff] }
 0x133   : > { %2635 = vrot.lane.b32.xlu0 %v2634_v42, %s2838_s9  ;;  %v2674_v4 = vpack.i.bf16 %v510_v63, %v509_v31 }
 0x134   : > { %v1710_v28 = vsel %vm1689_vm5, %v3637_v20, %v2417_v52  ;;  %v1711_v44 = vsel %vm1689_vm5, %v3633_v56, %v2418_v47  ;;  %v493_v47 = vld [vmem:[#allocation2 + $0x138] sm:$0xff]  ;;  %v494_v52 = vld [vmem:[#allocation2 + $0x140] sm:$0xff] }
 0x135   : > { %v2426_v22 = vpop.permute.xlu0 %2425  ;;  %2645 = vrot.lane.b32.xlu2 %v2644_v15, %s2836_s7 }
 0x136   : > { %v2428_v5 = vunpack.i.h.bf16 %v2426_v22  ;;  %v2427_v23 = vunpack.i.l.bf16 %v2426_v22 }
 0x137   : > { %2640 = vrot.lane.b32.xlu1 %v2639_v40, %s2838_s9  ;;  %v3767_v9 = vpop.permute.xlu2 %2480 }
 0x138   : > { %v3771_v20 = vsel %vm1689_vm5, %v3566_v30, %v2427_v23  ;;  %v3775_v56 = vsel %vm1689_vm5, %v3569_v29, %v2428_v5 }
 0x139   : > { %v2431_v16 = vpop.permute.xlu1 %2430 }
 0x13a   : > { %v2433_v35 = vunpack.i.h.bf16 %v2431_v16  ;;  %v2432_v41 = vunpack.i.l.bf16 %v2431_v16  ;;  %v557_v16 = vld [vmem:[#allocation2 + $0x13a] sm:$0xff] }
 0x13b   : > { %2650 = vrot.lane.b32.xlu0 %v2649_v34, %s2837_s8  ;;  %v526_v34 = vld [vmem:[#allocation2 + $0x141] sm:$0xff] }
 0x13c   : > { %v1716_v21 = vsel %vm1689_vm5, %v3660_v24, %v2432_v41  ;;  %v1717_v30 = vsel %vm1689_vm5, %v3656_v45, %v2433_v35  ;;  %v2679_v35 = vpack.i.bf16 %v526_v34, %v525_v11  ;;  %v507_v11 = vld [vmem:[#allocation2 + $0x61] sm:$0xff]  ;;  %v508_v34 = vld [vmem:[#allocation2 + $0x69] sm:$0xff] }
 0x13d   : > { %v2441_v57 = vpop.permute.xlu0 %2440  ;;  %2660 = vrot.lane.b32.xlu2 %v2659_v8, %s2838_s9  ;;  %v558_v8 = vld [vmem:[#allocation2 + $0x142] sm:$0xff] }
 0x13e   : > { %v2443_v29 = vunpack.i.h.bf16 %v2441_v57  ;;  %v2442_v42 = vunpack.i.l.bf16 %v2441_v57 }
 0x13f   : > { %2655 = vrot.lane.b32.xlu1 %v2654_v62, %s2837_s8  ;;  %v2496_v33 = vpop.permute.xlu2 %2495 }
 0x140   : > { %v3786_v13 = vsel %vm1689_vm5, %v3592_v51, %v2442_v42  ;;  %v3790_v45 = vsel %vm1689_vm5, %v3595_v50, %v2443_v29  ;;  %v2498_v24 = vunpack.i.h.bf16 %v2496_v33  ;;  %v2497_v15 = vunpack.i.l.bf16 %v2496_v33 }
 0x141   : > { %v2446_v40 = vpop.permute.xlu1 %2445  ;;  %v2669_v51 = vpack.i.bf16 %v494_v52, %v493_v47  ;;  %v2689_v29 = vpack.i.bf16 %v558_v8, %v557_v16 }
 0x142   : > { %v2448_v38 = vunpack.i.h.bf16 %v2446_v40  ;;  %v2447_v22 = vunpack.i.l.bf16 %v2446_v40  ;;  %v3793_v5 = vsel %vm1722_vm6, %v1710_v28, %v2497_v15  ;;  %v3796_v23 = vsel %vm1722_vm6, %v1711_v44, %v2498_v24  ;;  %v491_v24 = vld [vmem:[#allocation2 + $0x120] sm:$0xff]  ;;  %v492_v15 = vld [vmem:[#allocation2 + $0x128] sm:$0xff] }
 0x143   : > { %2665 = vrot.lane.b32.xlu0 %v2664_v37, %s2838_s9  ;;  %v523_v40 = vld [vmem:[#allocation2 + $0x121] sm:$0xff] }
 0x144   : > { %v1723_v50 = vsel %vm1722_vm6, %v3681_v7, %v2447_v22  ;;  %v1724_v53 = vsel %vm1722_vm6, %v3677_v58, %v2448_v38  ;;  %v2694_v38 = vpack.i.bf16 %v492_v15, %v491_v24  ;;  %v555_v24 = vld [vmem:[#allocation2 + $0x122] sm:$0xff]  ;;  %v556_v15 = vld [vmem:[#allocation2 + $0x12a] sm:$0xff] }
 0x145   : > { %v2456_v27 = vpop.permute.xlu0 %2455  ;;  %2675 = vrot.lane.b32.xlu2 %v2674_v4, %s2837_s8  ;;  %v524_v4 = vld [vmem:[#allocation2 + $0x129] sm:$0xff] }
 0x146   : > { %v2458_v49 = vunpack.i.h.bf16 %v2456_v27  ;;  %v2457_v28 = vunpack.i.l.bf16 %v2456_v27 }
 0x147   : > { %2670 = vrot.lane.b32.xlu1 %v2669_v51, %s2836_s7  ;;  %v2511_v44 = vpop.permute.xlu2 %2510 }
 0x148   : > { %v3807_v41 = vsel %vm1722_vm6, %v3616_v43, %v2457_v28  ;;  %v3811_v58 = vsel %vm1722_vm6, %v3619_v25, %v2458_v49  ;;  %v2513_v7 = vunpack.i.h.bf16 %v2511_v44  ;;  %v2512_v62 = vunpack.i.l.bf16 %v2511_v44 }
 0x149   : > { %v2461_v57 = vpop.permute.xlu1 %2460  ;;  %v2684_v43 = vpack.i.bf16 %v542_v59, %v541_v17  ;;  %v2704_v49 = vpack.i.bf16 %v524_v4, %v523_v40 }
 0x14a   : > { %v2463_v42 = vunpack.i.h.bf16 %v2461_v57  ;;  %v2462_v31 = vunpack.i.l.bf16 %v2461_v57  ;;  %v3814_v63 = vsel %vm1722_vm6, %v1716_v21, %v2512_v62  ;;  %v3817_v33 = vsel %vm1722_vm6, %v1717_v30, %v2513_v7  ;;  %v539_v7 = vld [vmem:[#allocation2 + $0x62] sm:$0xff]  ;;  %v540_v62 = vld [vmem:[#allocation2 + $0x6a] sm:$0xff] }
 0x14b   : > { %2680 = vrot.lane.b32.xlu0 %v2679_v35, %s2837_s8  ;;  %v490_v57 = vld [vmem:[#allocation2 + $0x110] sm:$0xff] }
 0x14c   : > { %v1729_v25 = vsel %vm1722_vm6, %v3703_v10, %v2462_v31  ;;  %v1730_v37 = vsel %vm1722_vm6, %v3699_v2, %v2463_v42  ;;  %v2709_v42 = vpack.i.bf16 %v540_v62, %v539_v7 }
 0x14d   : > { %v2471_v47 = vpop.permute.xlu0 %2470  ;;  %2690 = vrot.lane.b32.xlu2 %v2689_v29, %s2838_s9 }
 0x14e   : > { %v2473_v52 = vunpack.i.h.bf16 %v2471_v47  ;;  %v2472_v21 = vunpack.i.l.bf16 %v2471_v47 }
 0x14f   : > { %2685 = vrot.lane.b32.xlu1 %v2684_v43, %s2838_s9  ;;  %v2526_v30 = vpop.permute.xlu2 %2525 }
 0x150   : > { %v3828_v10 = vsel %vm1722_vm6, %v3640_v48, %v2472_v21  ;;  %v3832_v2 = vsel %vm1722_vm6, %v3643_v55, %v2473_v52  ;;  %v2528_v22 = vunpack.i.h.bf16 %v2526_v30  ;;  %v2527_v51 = vunpack.i.l.bf16 %v2526_v30 }
 0x151   : > { %v2476_v27 = vpop.permute.xlu1 %2475  ;;  %v2699_v48 = vpack.i.bf16 %v508_v34, %v507_v11 }
 0x152   : > { %v2478_v28 = vunpack.i.h.bf16 %v2476_v27  ;;  %v2477_v16 = vunpack.i.l.bf16 %v2476_v27  ;;  %v3835_v8 = vsel %vm1755_vm7, %v1723_v50, %v2527_v51  ;;  %v3838_v44 = vsel %vm1755_vm7, %v1724_v53, %v2528_v22  ;;  %v489_v53 = vld [vmem:[#allocation2 + $0x108] sm:$0xff]  ;;  %v506_v51 = vld [vmem:[#allocation2 + $0x51] sm:$0xff] }
 0x153   : > { %2695 = vrot.lane.b32.xlu0 %v2694_v38, %s2836_s7  ;;  %v2719_v52 = vpack.i.bf16 %v490_v57, %v489_v53  ;;  %v505_v22 = vld [vmem:[#allocation2 + $0x49] sm:$0xff]  ;;  %v538_v27 = vld [vmem:[#allocation2 + $0x52] sm:$0xff] }
 0x154   : > { %v3843_v55 = vsel %vm1722_vm6, %v3722_v6, %v2477_v16  ;;  %v3847_v35 = vsel %vm1722_vm6, %v3726_v19, %v2478_v28  ;;  %v2724_v28 = vpack.i.bf16 %v506_v51, %v505_v22  ;;  %v521_v16 = vld [vmem:[#allocation2 + $0x109] sm:$0xff] }
 0x155   : > { %v2486_v17 = vpop.permute.xlu0 %2485  ;;  %2705 = vrot.lane.b32.xlu2 %v2704_v49, %s2837_s8  ;;  %v553_v57 = vld [vmem:[#allocation2 + $0x10a] sm:$0xff] }
 0x156   : > { %v2488_v50 = vunpack.i.h.bf16 %v2486_v17  ;;  %v2487_v59 = vunpack.i.l.bf16 %v2486_v17 }
 0x157   : > { %2700 = vrot.lane.b32.xlu1 %v2699_v48, %s2837_s8  ;;  %v2541_v29 = vpop.permute.xlu2 %2540  ;;  %v522_v48 = vld [vmem:[#allocation2 + $0x111] sm:$0xff] }
 0x158   : > { %v3853_v6 = vsel %vm1722_vm6, %v3663_v46, %v2487_v59  ;;  %v3857_v19 = vsel %vm1722_vm6, %v3666_v14, %v2488_v50  ;;  %v2543_v31 = vunpack.i.h.bf16 %v2541_v29  ;;  %v2542_v43 = vunpack.i.l.bf16 %v2541_v29 }
 0x159   : > { %v2491_v47 = vpop.permute.xlu1 %2490  ;;  %v2714_v46 = vpack.i.bf16 %v556_v15, %v555_v24  ;;  %v2729_v59 = vpack.i.bf16 %v522_v48, %v521_v16  ;;  %v503_v15 = vld [vmem:[#allocation2 + $0x31] sm:$0xff] }
 0x15a   : > { %v2493_v21 = vunpack.i.h.bf16 %v2491_v47  ;;  %v2492_v40 = vunpack.i.l.bf16 %v2491_v47  ;;  %v3860_v4 = vsel %vm1755_vm7, %v1729_v25, %v2542_v43  ;;  %v3863_v30 = vsel %vm1755_vm7, %v1730_v37, %v2543_v31  ;;  %v537_v37 = vld [vmem:[#allocation2 + $0x4a] sm:$0xff]  ;;  %v520_v31 = vld [vmem:[#allocation2 + $0xf9] sm:$0xff] }
 0x15b   : > { %2710 = vrot.lane.b32.xlu0 %v2709_v42, %s2838_s9  ;;  %v2734_v62 = vpack.i.bf16 %v538_v27, %v537_v37  ;;  %v519_v42 = vld [vmem:[#allocation2 + $0xf1] sm:$0xff] }
 0x15c   : > { %v3868_v14 = vsel %vm1722_vm6, %v3748_v3, %v2492_v40  ;;  %v3872_v38 = vsel %vm1722_vm6, %v3752_v18, %v2493_v21  ;;  %v535_v21 = vld [vmem:[#allocation2 + $0x32] sm:$0xff]  ;;  %v536_v40 = vld [vmem:[#allocation2 + $0x3a] sm:$0xff] }
 0x15d   : > { %v2501_v11 = vpop.permute.xlu0 %2500  ;;  %2720 = vrot.lane.b32.xlu2 %v2719_v52, %s2836_s7  ;;  %v2749_v52 = vpack.i.bf16 %v520_v31, %v519_v42  ;;  %v551_v27 = vld [vmem:[#allocation2 + $0xf2] sm:$0xff]  ;;  %v2483_v31 = vunpack.i.h.bf16 %v3767_v9  ;;  %s1990_s7 = sshll.u32 %s1987_s5, 4  ;;  %s1991_s7 = int_to_ptr.hbm [resolvable:$true] %s1990_s7 }
 0x15e   : > { %v2503_v25 = vunpack.i.h.bf16 %v2501_v11  ;;  %v2502_v34 = vunpack.i.l.bf16 %v2501_v11  ;;  %v2754_v11 = vpack.i.bf16 %v536_v40, %v535_v21 }
 0x15f   : > { %2715 = vrot.lane.b32.xlu1 %v2714_v46, %s2838_s9  ;;  %v3876_v49 = vpop.permute.xlu2 %2555 }
 0x160   : > { %v3880_v3 = vsel %vm1722_vm6, %v3684_v61, %v2502_v34  ;;  %v3884_v18 = vsel %vm1722_vm6, %v3687_v1, %v2503_v25  ;;  %v554_v1 = vld [vmem:[#allocation2 + $0x112] sm:$0xff] }
 0x161   : > { %v2506_v7 = vpop.permute.xlu1 %2505  ;;  %v2739_v24 = vpack.i.bf16 %v554_v1, %v553_v57  ;;  %v2482_v1 = vunpack.i.l.bf16 %v3767_v9 }
 0x162   : > { %v2508_v17 = vunpack.i.h.bf16 %v2506_v7  ;;  %v2507_v50 = vunpack.i.l.bf16 %v2506_v7 }
 0x163   : > { %2725 = vrot.lane.b32.xlu0 %v2724_v28, %s2837_s8  ;;  %v552_v28 = vld [vmem:[#allocation2 + $0xfa] sm:$0xff] }
 0x164   : > { %v3889_v53 = vsel %vm1722_vm6, %v3771_v20, %v2507_v50  ;;  %v3893_v61 = vsel %vm1722_vm6, %v3775_v56, %v2508_v17  ;;  %v504_v20 = vld [vmem:[#allocation2 + $0x39] sm:$0xff] }
 0x165   : > { %v3895_v29 = vpop.permute.xlu0 %2515  ;;  %2735 = vrot.lane.b32.xlu2 %v2734_v62, %s2838_s9  ;;  %v2744_v56 = vpack.i.bf16 %v504_v20, %v503_v15  ;;  %v2759_v62 = vpack.i.bf16 %v552_v28, %v551_v27 }
 0x167   : > { %2730 = vrot.lane.b32.xlu1 %v2729_v59, %s2837_s8  ;;  %v3899_v43 = vpop.permute.xlu2 %2570 }
 0x169   : > { %v2521_v47 = vpop.permute.xlu1 %2520 }
 0x16a   : > { %v2523_v40 = vunpack.i.h.bf16 %v2521_v47 }
 0x16b   : > { %2740 = vrot.lane.b32.xlu0 %v2739_v24, %s2838_s9 }
 0x16d   : > { %v2531_v46 = vpop.permute.xlu0 %2530  ;;  %2750 = vrot.lane.b32.xlu2 %v2749_v52, %s2837_s8 }
 0x16e   : > { %v2533_v22 = vunpack.i.h.bf16 %v2531_v46  ;;  %v2532_v51 = vunpack.i.l.bf16 %v2531_v46  ;;  %v2522_v46 = vunpack.i.l.bf16 %v2521_v47 }
 0x16f   : > { %2745 = vrot.lane.b32.xlu1 %v2744_v56, %s2837_s8  ;;  %v2586_v37 = vpop.permute.xlu2 %2585  ;;  %s2780_s8 = sshra.s32 %s1991_s7, 4  ;;  %s2781_s8 = int_to_ptr.hbm [resolvable:$true] %s2780_s8 }
 0x170   : > { %v3906_v25 = vsel %vm1755_vm7, %v3729_v12, %v2532_v51  ;;  %v3910_v34 = vsel %vm1755_vm7, %v3732_v36, %v2533_v22  ;;  %v2588_v9 = vunpack.i.h.bf16 %v2586_v37  ;;  %v2587_v22 = vunpack.i.l.bf16 %v2586_v37  ;;  %p2787_p0 = scmp.lt.s32.totalorder %s2781_s8, %s4153_s3 }
 0x171   : > { %v2536_v16 = vpop.permute.xlu1 %2535 }
 0x172   : > { %v2538_v48 = vunpack.i.h.bf16 %v2536_v16  ;;  %v2537_v7 = vunpack.i.l.bf16 %v2536_v16  ;;  %v2572_v16 = vunpack.i.l.bf16 %v3899_v43 }
 0x173   : > { %2755 = vrot.lane.b32.xlu0 %v2754_v11, %s2838_s9  ;;  %v1738_v11 = vsel %vm1722_vm6, %v3742_v26, %v2483_v31  ;;  %v1753_v26 = vsel %vm1722_vm6, %v3786_v13, %v2522_v46  ;;  %v2518_v46 = vunpack.i.h.bf16 %v3895_v29 }
 0x174   : > { %v3915_v17 = vsel %vm1755_vm7, %v3807_v41, %v2537_v7  ;;  %v3919_v12 = vsel %vm1755_vm7, %v3811_v58, %v2538_v48  ;;  %v1737_v58 = vsel %vm1722_vm6, %v3738_v39, %v2482_v1  ;;  %v1754_v48 = vsel %vm1722_vm6, %v3790_v45, %v2523_v40 }
 0x175   : > { %v3921_v50 = vpop.permute.xlu0 %2545 }
 0x177   : > { %2760 = vrot.lane.b32.xlu1 %v2759_v62, %s2838_s9  ;;  %v3926_v59 = vpop.permute.xlu2 %2600  ;;  %s2782_s9 = scalar_lea.hbm %s2781_s8, 32 }
 0x178   : > { %p2783_p11 = scmp.ne.s32.totalorder %s2781_s8, %s2782_s9  ;;  %p2788_p1 = scmp.lt.s32.totalorder %s2786_s17, %s2782_s9 }
 0x179   : > { %v3924_v36 = vpop.permute.xlu1 %2550 }
 0x17a   : > { %p2784_p12 = pnand %p2783_p11, %p2899_p5  ;;  %p2789_p2 = por %p2788_p1, %p2787_p0 }
 0x17c   : > { %p2785_p13 = pneg %p2784_p12 }
 0x17d   : > { %v2561_v57 = vpop.permute.xlu0 %2560 }
 0x17e   : > { %v2563_v15 = vunpack.i.h.bf16 %v2561_v57  ;;  %v2562_v20 = vunpack.i.l.bf16 %v2561_v57  ;;  %p2790_p3 = pnand %p2789_p2, %p2785_p13 }
 0x17f   : > { %v3940_v21 = vpop.permute.xlu2 %2615 }
 0x180   : > { %v1770_v28 = vsel %vm1755_vm7, %v1737_v58, %v2562_v20 }
 0x181   : > { %v2566_v42 = vpop.permute.xlu1 %2565 }
 0x182   : > { %v2568_v41 = vunpack.i.h.bf16 %v2566_v42  ;;  %v2567_v24 = vunpack.i.l.bf16 %v2566_v42 }
 0x184   : > { %v3934_v52 = vsel %vm1755_vm7, %v3853_v6, %v2567_v24  ;;  %v3938_v56 = vsel %vm1755_vm7, %v3857_v19, %v2568_v41  ;;  %v2573_v6 = vunpack.i.h.bf16 %v3899_v43  ;;  %v1771_v19 = vsel %vm1755_vm7, %v1738_v11, %v2563_v15 }
 0x185   : > { %v2576_v51 = vpop.permute.xlu0 %2575  ;;  %v1786_v43 = vsel %vm1755_vm7, %v1753_v26, %v2572_v16 }
 0x186   : > { %v2578_v27 = vunpack.i.h.bf16 %v2576_v51  ;;  %v2577_v39 = vunpack.i.l.bf16 %v2576_v51  ;;  %v1787_v41 = vsel %vm1755_vm7, %v1754_v48, %v2573_v6 }
 0x187   : > { %v3961_v20 = vpop.permute.xlu2 %2630 }
 0x188   : > { %v1803_v47 = vsel %vm1788_vm9, %v1770_v28, %v2577_v39  ;;  %v1804_v37 = vsel %vm1788_vm9, %v1771_v19, %v2578_v27  ;;  %v2557_v19 = vunpack.i.l.bf16 %v3876_v49 }
 0x189   : > { %v2581_v7 = vpop.permute.xlu1 %2580  ;;  %v1836_v62 = vsel %vm1821_vm8, %v1803_v47, %v2587_v22  ;;  %v1837_v57 = vsel %vm1821_vm8, %v1804_v37, %v2588_v9  ;;  %v2517_v9 = vunpack.i.l.bf16 %v3895_v29  ;;  %v1752_v47 = vsel %vm1722_vm6, %v3709_v32, %v2518_v46 }
 0x18a   : > { %v2583_v1 = vunpack.i.h.bf16 %v2581_v7  ;;  %v2582_v42 = vunpack.i.l.bf16 %v2581_v7  ;;  %v1861_v31 = vpack.c.bf16 %v1837_v57, %v1836_v62  ;;  %v2618_v29 = vunpack.i.h.bf16 %v3940_v21 }
 0x18b   : > { %v1751_v16 = vsel %vm1722_vm6, %v3706_v60, %v2517_v9  ;;  %v2617_v37 = vunpack.i.l.bf16 %v3940_v21  ;;  %v2558_v62 = vunpack.i.h.bf16 %v3876_v49  ;;  %v2602_v60 = vunpack.i.l.bf16 %v3926_v59 }
 0x18c   : > { %v1913_v24 = vsel %vm1887_vm10, %v1861_v31, 0  ;;  %v1819_v13 = vsel %vm1788_vm9, %v1786_v43, %v2582_v42  ;;  %v1820_v45 = vsel %vm1788_vm9, %v1787_v41, %v2583_v1  ;;  %v2603_v42 = vunpack.i.h.bf16 %v3926_v59 }
 0x18d   : > { %v2591_v15 = vpop.permute.xlu0 %2590  ;;  %1939 = vmatpush.bf16.xpose.msra.mxu0 %v1913_v24  ;;  %v1768_v21 = vsel %vm1755_vm7, %v3843_v55, %v2557_v19 }
 0x18e   : > { %v2593_v58 = vunpack.i.h.bf16 %v2591_v15  ;;  %v2592_v40 = vunpack.i.l.bf16 %v2591_v15  ;;  %v1769_v15 = vsel %vm1755_vm7, %v3847_v35, %v2558_v62  ;;  %v2553_v35 = vunpack.i.h.bf16 %v3924_v36 }
 0x18f   : > { %v3980_v31 = vpop.permute.xlu2 %2645 }
 0x190   : > { %v1852_v22 = vsel %vm1821_vm8, %v1819_v13, %v2592_v40  ;;  %v1853_v51 = vsel %vm1821_vm8, %v1820_v45, %v2593_v58  ;;  %v1801_v58 = vsel %vm1788_vm9, %v1768_v21, %v2602_v60  ;;  %v1802_v40 = vsel %vm1788_vm9, %v1769_v15, %v2603_v42 }
 0x191   : > { %v2596_v11 = vpop.permute.xlu1 %2595  ;;  %v1869_v27 = vpack.c.bf16 %v1853_v51, %v1852_v22  ;;  %v2548_v21 = vunpack.i.h.bf16 %v3921_v50 }
 0x192   : > { %v2598_v39 = vunpack.i.h.bf16 %v2596_v11  ;;  %v2597_v6 = vunpack.i.l.bf16 %v2596_v11 }
 0x193   : > { %v1937_v28 = vsel %vm1887_vm10, %v1869_v27, 0  ;;  %v2552_v27 = vunpack.i.l.bf16 %v3924_v36 }
 0x194   : > { %1953 = vmatpush.bf16.xpose.msra.mxu1 %v1937_v28  ;;  %v1784_v26 = vsel %vm1755_vm7, %v1751_v16, %v2597_v6  ;;  %v1785_v48 = vsel %vm1755_vm7, %v1752_v47, %v2598_v39  ;;  %v1767_v47 = vsel %vm1755_vm7, %v3832_v2, %v2553_v35  ;;  %v2647_v35 = vunpack.i.l.bf16 %v3980_v31 }
 0x195   : > { %v2606_v7 = vpop.permute.xlu0 %2605  ;;  %v1766_v16 = vsel %vm1755_vm7, %v3828_v10, %v2552_v27 }
 0x196   : > { %v2608_v57 = vunpack.i.h.bf16 %v2606_v7  ;;  %v2607_v1 = vunpack.i.l.bf16 %v2606_v7 }
 0x197   : > { %v2661_v6 = vpop.permute.xlu2 %2660 }
 0x198   : > { %v1817_v32 = vsel %vm1788_vm9, %v1784_v26, %v2607_v1  ;;  %v1818_v43 = vsel %vm1788_vm9, %v1785_v48, %v2608_v57  ;;  %v2633_v57 = vunpack.i.h.bf16 %v3961_v20  ;;  %v2632_v1 = vunpack.i.l.bf16 %v3961_v20 }
 0x199   : > { %v2611_v41 = vpop.permute.xlu1 %2610  ;;  %v1850_v24 = vsel %vm1821_vm8, %v1817_v32, %v2617_v37  ;;  %v1851_v49 = vsel %vm1821_vm8, %v1818_v43, %v2618_v29 }
 0x19a   : > { %v2613_v13 = vunpack.i.h.bf16 %v2611_v41  ;;  %v2612_v45 = vunpack.i.l.bf16 %v2611_v41  ;;  %v1868_v59 = vpack.c.bf16 %v1851_v49, %v1850_v24  ;;  %v2547_v49 = vunpack.i.l.bf16 %v3921_v50 }
 0x19c   : > { %v1934_v46 = vsel %vm1887_vm10, %v1868_v59, 0  ;;  %v1834_v9 = vsel %vm1821_vm8, %v1801_v58, %v2612_v45  ;;  %v1835_v55 = vsel %vm1821_vm8, %v1802_v40, %v2613_v13  ;;  %v2663_v59 = vunpack.i.h.bf16 %v2661_v6 }
 0x19d   : > { %v2621_v22 = vpop.permute.xlu0 %2620  ;;  %1954 = vmatpush.bf16.xpose.msra.mxu1 %v1934_v46  ;;  %v1860_v51 = vpack.c.bf16 %v1835_v55, %v1834_v9  ;;  %v2662_v58 = vunpack.i.l.bf16 %v2661_v6  ;;  %v1764_v50 = vsel %vm1755_vm7, %v3755_v0, %v2547_v49 }
 0x19e   : > { %v2623_v29 = vunpack.i.h.bf16 %v2621_v22  ;;  %v2622_v37 = vunpack.i.l.bf16 %v2621_v22  ;;  %v1765_v22 = vsel %vm1755_vm7, %v3758_v54, %v2548_v21  ;;  %v1780_v54 = vsel %vm1755_vm7, %v3889_v53, %v2647_v35 }
 0x19f   : > { %v1910_v11 = vsel %vm1887_vm10, %v1860_v51, 0  ;;  %v4017_v13 = vpop.permute.xlu2 %2675 }
 0x1a0   : > { %1940 = vmatpush.bf16.xpose.msra.mxu0 %v1910_v11  ;;  %v1782_v42 = vsel %vm1755_vm7, %v3814_v63, %v2622_v37  ;;  %v1783_v10 = vsel %vm1755_vm7, %v3817_v33, %v2623_v29  ;;  %v2648_v11 = vunpack.i.h.bf16 %v3980_v31 }
 0x1a1   : > { %v2626_v39 = vpop.permute.xlu1 %2625  ;;  %v1815_v15 = vsel %vm1788_vm9, %v1782_v42, %v2632_v1  ;;  %v1816_v63 = vsel %vm1788_vm9, %v1783_v10, %v2633_v57 }
 0x1a2   : > { %v2628_v28 = vunpack.i.h.bf16 %v2626_v39  ;;  %v2627_v19 = vunpack.i.l.bf16 %v2626_v39  ;;  %v1781_v29 = vsel %vm1755_vm7, %v3893_v61, %v2648_v11 }
 0x1a4   : > { %v1799_v48 = vsel %vm1788_vm9, %v1766_v16, %v2627_v19  ;;  %v1800_v7 = vsel %vm1788_vm9, %v1767_v47, %v2628_v28 }
 0x1a5   : > { %v2636_v26 = vpop.permute.xlu0 %2635 }
 0x1a6   : > { %v2638_v62 = vunpack.i.h.bf16 %v2636_v26  ;;  %v2637_v36 = vunpack.i.l.bf16 %v2636_v26 }
 0x1a8   : > { %v1832_v2 = vsel %vm1821_vm8, %v1799_v48, %v2637_v36  ;;  %v1833_v60 = vsel %vm1821_vm8, %v1800_v7, %v2638_v62  ;;  %v2691_v7 = vpop.permute.xlu2 %2690 }
 0x1a9   : > { %v2641_v32 = vpop.permute.xlu1 %2640  ;;  %v1859_v43 = vpack.c.bf16 %v1833_v60, %v1832_v2  ;;  %v2693_v60 = vunpack.i.h.bf16 %v2691_v7 }
 0x1aa   : > { %v2643_v41 = vunpack.i.h.bf16 %v2641_v32  ;;  %v2642_v24 = vunpack.i.l.bf16 %v2641_v32  ;;  %v2692_v32 = vunpack.i.l.bf16 %v2691_v7 }
 0x1ab   : > { %v1907_v20 = vsel %vm1887_vm10, %v1859_v43, 0 }
 0x1ac   : > { %1941 = vmatpush.bf16.xpose.msra.mxu0 %v1907_v20  ;;  %v1848_v33 = vsel %vm1821_vm8, %v1815_v15, %v2642_v24  ;;  %v1849_v45 = vsel %vm1821_vm8, %v1816_v63, %v2643_v41  ;;  %v2678_v20 = vunpack.i.h.bf16 %v4017_v13  ;;  %v2677_v15 = vunpack.i.l.bf16 %v4017_v13 }
 0x1ad   : > { %v2651_v40 = vpop.permute.xlu0 %2650  ;;  %v1867_v46 = vpack.c.bf16 %v1849_v45, %v1848_v33 }
 0x1ae   : > { %v2653_v9 = vunpack.i.h.bf16 %v2651_v40  ;;  %v2652_v55 = vunpack.i.l.bf16 %v2651_v40 }
 0x1af   : > { %v1931_v51 = vsel %vm1887_vm10, %v1867_v46, 0 }
 0x1b0   : > { %1955 = vmatpush.bf16.xpose.msra.mxu1 %v1931_v51  ;;  %v1797_v27 = vsel %vm1788_vm9, %v1764_v50, %v2652_v55  ;;  %v1798_v39 = vsel %vm1788_vm9, %v1765_v22, %v2653_v9  ;;  %v2706_v63 = vpop.permute.xlu2 %2705  ;;  %v1795_v9 = vsel %vm1788_vm9, %v3860_v4, %v2677_v15  ;;  %v1796_v55 = vsel %vm1788_vm9, %v3863_v30, %v2678_v20 }
 0x1b1   : > { %v2656_v6 = vpop.permute.xlu1 %2655  ;;  %v1830_v28 = vsel %vm1821_vm8, %v1797_v27, %v2662_v58  ;;  %v1831_v19 = vsel %vm1821_vm8, %v1798_v39, %v2663_v59 }
 0x1b2   : > { %v2658_v0 = vunpack.i.h.bf16 %v2656_v6  ;;  %v2657_v16 = vunpack.i.l.bf16 %v2656_v6  ;;  %v1858_v47 = vpack.c.bf16 %v1831_v19, %v1830_v28 }
 0x1b4   : > { %v1904_v31 = vsel %vm1887_vm10, %v1858_v47, 0  ;;  %v1813_v26 = vsel %vm1788_vm9, %v1780_v54, %v2657_v16  ;;  %v1814_v48 = vsel %vm1788_vm9, %v1781_v29, %v2658_v0  ;;  %v2708_v29 = vunpack.i.h.bf16 %v2706_v63 }
 0x1b5   : > { %v2666_v37 = vpop.permute.xlu0 %2665  ;;  %1942 = vmatpush.bf16.xpose.msra.mxu0 %v1904_v31  ;;  %v2707_v31 = vunpack.i.l.bf16 %v2706_v63 }
 0x1b6   : > { %v2668_v62 = vunpack.i.h.bf16 %v2666_v37  ;;  %v2667_v36 = vunpack.i.l.bf16 %v2666_v37 }
 0x1b8   : > { %v1846_v57 = vsel %vm1821_vm8, %v1813_v26, %v2667_v36  ;;  %v1847_v1 = vsel %vm1821_vm8, %v1814_v48, %v2668_v62  ;;  %v2721_v39 = vpop.permute.xlu2 %2720 }
 0x1b9   : > { %v2671_v42 = vpop.permute.xlu1 %2670  ;;  %v1866_v53 = vpack.c.bf16 %v1847_v1, %v1846_v57  ;;  %v2722_v20 = vunpack.i.l.bf16 %v2721_v39 }
 0x1ba   : > { %v2673_v10 = vunpack.i.h.bf16 %v2671_v42  ;;  %v2672_v2 = vunpack.i.l.bf16 %v2671_v42 }
 0x1bb   : > { %v1928_v61 = vsel %vm1887_vm10, %v1866_v53, 0 }
 0x1bc   : > { %1956 = vmatpush.bf16.xpose.msra.mxu1 %v1928_v61  ;;  %v1778_v43 = vsel %vm1755_vm7, %v3880_v3, %v2672_v2  ;;  %v1779_v21 = vsel %vm1755_vm7, %v3884_v18, %v2673_v10 }
 0x1bd   : > { %v2681_v41 = vpop.permute.xlu0 %2680 }
 0x1be   : > { %v2683_v24 = vunpack.i.h.bf16 %v2681_v41  ;;  %v2682_v49 = vunpack.i.l.bf16 %v2681_v41  ;;  %v1871_v41 = vld [vmem:[%s4152_s2 + $0x8] sm:$0xff] }
 0x1c0   : > { %v1811_v33 = vsel %vm1788_vm9, %v1778_v43, %v2682_v49  ;;  %v1812_v45 = vsel %vm1788_vm9, %v1779_v21, %v2683_v24  ;;  %v2736_v53 = vpop.permute.xlu2 %2735  ;;  %v1870_v24 = vld [vmem:[%s4152_s2] sm:$0xff]  ;;  %v2723_v49 = vunpack.i.h.bf16 %v2721_v39 }
 0x1c1   : > { %v2686_v59 = vpop.permute.xlu1 %2685  ;;  %v1844_v58 = vsel %vm1821_vm8, %v1811_v33, %v2692_v32  ;;  %v1845_v3 = vsel %vm1821_vm8, %v1812_v45, %v2693_v60  ;;  %v2738_v10 = vunpack.i.h.bf16 %v2736_v53  ;;  %v2737_v2 = vunpack.i.l.bf16 %v2736_v53 }
 0x1c2   : > { %v2688_v40 = vunpack.i.h.bf16 %v2686_v59  ;;  %v2687_v46 = vunpack.i.l.bf16 %v2686_v59  ;;  %v1865_v18 = vpack.c.bf16 %v1845_v3, %v1844_v58  ;;  %v2839_v33 = vmov 0  }
 0x1c3   : > { %2765 = vset.pattern.permute.xlu0 %v2839_v33  ;;  %2764 = vset.pattern.permute.xlu2 %v2839_v33 }
 0x1c4   : > { %v1925_v13 = vsel %vm1887_vm10, %v1865_v18, 0  ;;  %v1828_v50 = vsel %vm1821_vm8, %v1795_v9, %v2687_v46  ;;  %v1829_v22 = vsel %vm1821_vm8, %v1796_v55, %v2688_v40  ;;  %1879 = vperm.xlu0 %2765, %v1871_v41   ;;  %1874 = vperm.xlu2 %2764, %v1870_v24   ;;  %v1774_v18 = vsel %vm1755_vm7, %v3868_v14, %v2722_v20 }
 0x1c5   : > { %v2696_v51 = vpop.permute.xlu0 %2695  ;;  %1957 = vmatpush.bf16.xpose.msra.mxu1 %v1925_v13  ;;  %v1857_v11 = vpack.c.bf16 %v1829_v22, %v1828_v50 }
 0x1c6   : > { %v2698_v4 = vunpack.i.h.bf16 %v2696_v51  ;;  %v2697_v19 = vunpack.i.l.bf16 %v2696_v51 }
 0x1c7   : > { %v1901_v35 = vsel %vm1887_vm10, %v1857_v11, 0 }
 0x1c8   : > { %1943 = vmatpush.bf16.xpose.msra.mxu0 %v1901_v35  ;;  %v1776_v37 = vsel %vm1755_vm7, %v3793_v5, %v2697_v19  ;;  %v1777_v26 = vsel %vm1755_vm7, %v3796_v23, %v2698_v4 }
 0x1c9   : > { %v2701_v27 = vpop.permute.xlu1 %2700  ;;  %v1809_v1 = vsel %vm1788_vm9, %v1776_v37, %v2707_v31  ;;  %v1810_v42 = vsel %vm1788_vm9, %v1777_v26, %v2708_v29 }
 0x1ca   : > { %v2703_v6 = vunpack.i.h.bf16 %v2701_v27  ;;  %v2702_v28 = vunpack.i.l.bf16 %v2701_v27 }
 0x1cc   : > { %v1793_v30 = vsel %vm1788_vm9, %v3915_v17, %v2702_v28  ;;  %v1794_v16 = vsel %vm1788_vm9, %v3919_v12, %v2703_v6  ;;  %v2751_v6 = vpop.permute.xlu2 %2750 }
 0x1cd   : > { %v2711_v0 = vpop.permute.xlu0 %2710 }
 0x1ce   : > { %v2713_v47 = vunpack.i.h.bf16 %v2711_v0  ;;  %v2712_v54 = vunpack.i.l.bf16 %v2711_v0 }
 0x1d0   : > { %v1826_v48 = vsel %vm1821_vm8, %v1793_v30, %v2712_v54  ;;  %v1827_v7 = vsel %vm1821_vm8, %v1794_v16, %v2713_v47  ;;  %v2753_v16 = vunpack.i.h.bf16 %v2751_v6  ;;  %v2752_v47 = vunpack.i.l.bf16 %v2751_v6 }
 0x1d1   : > { %v2716_v62 = vpop.permute.xlu1 %2715  ;;  %v1856_v36 = vpack.c.bf16 %v1827_v7, %v1826_v48 }
 0x1d2   : > { %v2718_v17 = vunpack.i.h.bf16 %v2716_v62  ;;  %v2717_v57 = vunpack.i.l.bf16 %v2716_v62 }
 0x1d3   : > { %v1898_v12 = vsel %vm1887_vm10, %v1856_v36, 0 }
 0x1d4   : > { %1944 = vmatpush.bf16.xpose.msra.mxu0 %v1898_v12  ;;  %v1842_v5 = vsel %vm1821_vm8, %v1809_v1, %v2717_v57  ;;  %v1843_v23 = vsel %vm1821_vm8, %v1810_v42, %v2718_v17  ;;  %v2072_v12 = vld [vmem:[%s4151_s1] sm:$0xff] }
 0x1d5   : > { %v2726_v61 = vpop.permute.xlu0 %2725  ;;  %v1864_v60 = vpack.c.bf16 %v1843_v23, %v1842_v5 }
 0x1d6   : > { %v2728_v32 = vunpack.i.h.bf16 %v2726_v61  ;;  %v2727_v43 = vunpack.i.l.bf16 %v2726_v61 }
 0x1d7   : > { %v1922_v21 = vsel %vm1887_vm10, %v1864_v60, 0 }
 0x1d8   : > { %1958 = vmatpush.bf16.xpose.msra.mxu1 %v1922_v21  ;;  %v1791_v15 = vsel %vm1788_vm9, %v3906_v25, %v2727_v43  ;;  %v1792_v63 = vsel %vm1788_vm9, %v3910_v34, %v2728_v32  ;;  %v1775_v25 = vsel %vm1755_vm7, %v3872_v38, %v2723_v49 }
 0x1d9   : > { %v2731_v45 = vpop.permute.xlu1 %2730  ;;  %v1824_v59 = vsel %vm1821_vm8, %v1791_v15, %v2737_v2  ;;  %v1825_v58 = vsel %vm1821_vm8, %v1792_v63, %v2738_v10 }
 0x1da   : > { %v2733_v3 = vunpack.i.h.bf16 %v2731_v45  ;;  %v2732_v40 = vunpack.i.l.bf16 %v2731_v45  ;;  %v1855_v46 = vpack.c.bf16 %v1825_v58, %v1824_v59 }
 0x1dc   : > { %v1895_v34 = vsel %vm1887_vm10, %v1855_v46, 0  ;;  %v1807_v55 = vsel %vm1788_vm9, %v1774_v18, %v2732_v40  ;;  %v1808_v13 = vsel %vm1788_vm9, %v1775_v25, %v2733_v3 }
 0x1dd   : > { %v2741_v9 = vpop.permute.xlu0 %2740  ;;  %1945 = vmatpush.bf16.xpose.msra.mxu0 %v1895_v34 }
 0x1de   : > { %v2743_v50 = vunpack.i.h.bf16 %v2741_v9  ;;  %v2742_v22 = vunpack.i.l.bf16 %v2741_v9 }
 0x1e0   : > { %v1840_v51 = vsel %vm1821_vm8, %v1807_v55, %v2742_v22  ;;  %v1841_v11 = vsel %vm1821_vm8, %v1808_v13, %v2743_v50 }
 0x1e1   : > { %v2746_v35 = vpop.permute.xlu1 %2745  ;;  %v1863_v27 = vpack.c.bf16 %v1841_v11, %v1840_v51 }
 0x1e2   : > { %v2748_v14 = vunpack.i.h.bf16 %v2746_v35  ;;  %v2747_v39 = vunpack.i.l.bf16 %v2746_v35 }
 0x1e3   : > { %v1919_v38 = vsel %vm1887_vm10, %v1863_v27, 0 }
 0x1e4   : > { %1959 = vmatpush.bf16.xpose.msra.mxu1 %v1919_v38  ;;  %v1789_v4 = vsel %vm1788_vm9, %v3835_v8, %v2747_v39  ;;  %v1790_v19 = vsel %vm1788_vm9, %v3838_v44, %v2748_v14  ;;  %v1805_v8 = vsel %vm1788_vm9, %v3934_v52, %v2752_v47  ;;  %v1806_v44 = vsel %vm1788_vm9, %v3938_v56, %v2753_v16 }
 0x1e5   : > { %v2756_v28 = vpop.permute.xlu0 %2755 }
 0x1e6   : > { %v2758_v0 = vunpack.i.h.bf16 %v2756_v28  ;;  %v2757_v30 = vunpack.i.l.bf16 %v2756_v28 }
 0x1e8   : > { %v1822_v54 = vsel %vm1821_vm8, %v1789_v4, %v2757_v30  ;;  %v1823_v29 = vsel %vm1821_vm8, %v1790_v19, %v2758_v0 }
 0x1e9   : > { %v2761_v31 = vpop.permute.xlu1 %2760  ;;  %v1854_v37 = vpack.c.bf16 %v1823_v29, %v1822_v54 }
 0x1ea   : > { %v2763_v26 = vunpack.i.h.bf16 %v2761_v31  ;;  %v2762_v48 = vunpack.i.l.bf16 %v2761_v31 }
 0x1eb   : > { %v1892_v7 = vsel %vm1887_vm10, %v1854_v37, 0 }
 0x1ec   : > { %1946 = vmatpush.bf16.xpose.msra.mxu0 %v1892_v7  ;;  %v1838_v62 = vsel %vm1821_vm8, %v1805_v8, %v2762_v48  ;;  %v1839_v36 = vsel %vm1821_vm8, %v1806_v44, %v2763_v26 }
 0x1ed   : > { %v1862_v17 = vpack.c.bf16 %v1839_v36, %v1838_v62 }
 0x1ef   : > { %v1916_v57 = vsel %vm1887_vm10, %v1862_v17, 0 }
 0x1f0   : > { %1960 = vmatpush.bf16.xpose.msra.mxu1 %v1916_v57 }
 0x1f3   : > { %2064 = vmatmul.msk.bf16.vlgmr.msra.gmra.mxu0 %vm1887_vm10, %v2072_v12 }
 0x1f7   : > { %2065 = vmatmul.msk.bf16.vlgmr.msra.gmra.mxu1 %vm1887_vm10, %v2072_v12 }
 0x21e   : > { %v1875_v52 = vpop.permute.xlu2 %1874 }
 0x236   : > { %v1880_v23 = vpop.permute.xlu0 %1879 }
 0x270   : > { %v1948_v56 = vpop.f32.mrf.mxu0 }
 0x271   : > { %v1949_v1 = vadd.f32 %v1948_v56, %v1875_v52 }
 0x273   : > { %v1967_v42 = vmax.f32 %v1949_v1, 0.0 }
 0x274   : > { %v1962_v53 = vpop.f32.mrf.mxu1 }
 0x275   : > { %1971 = vst [vmem:[%s163_s27] sm:$0xff] %v1967_v42  ;;  %v1963_v5 = vadd.f32 %v1962_v53, %v1875_v52 }
 0x277   : > { %v1968_v10 = vmax.f32 %v1963_v5, 0.0 }
 0x278   : > { %v1950_v2 = vpop.f32.mrf.mxu0 }
 0x279   : > { %1972 = vst [vmem:[%s163_s27 + $0x8] sm:$0xff] %v1968_v10  ;;  %v1951_v61 = vadd.f32 %v1950_v2, %v1880_v23 }
 0x27b   : > { %v1969_v60 = vmax.f32 %v1951_v61, 0.0 }
 0x27c   : > { %v1964_v32 = vpop.f32.mrf.mxu1 }
 0x27d   : > { %1973 = vst [vmem:[%s163_s27 + $0x10] sm:$0xff] %v1969_v60  ;;  %v1965_v43 = vadd.f32 %v1964_v32, %v1880_v23 }
 0x27f   : > { %v1970_v21 = vmax.f32 %v1965_v43, 0.0 }
 0x281   : > { %1974 = vst [vmem:[%s163_s27 + $0x18] sm:$0xff] %v1970_v21 }
 0x282   : > { %2793 = shalt.err (!%p2790_p3)
}
 0x283   : > { %s2840_s24 = smov 256  }
 0x284   : > { %2074 = dma.vmem_to_hbm [thread:$0]  (%p2899_p5), %s1989_s6, 512, %s1991_s7, %s1976_s16, %s2840_s24, %s2840_s24, %s2832_s30  }
 0x285 PF: > { %p2080_p4 = scmp.ge.s32.totalorder %s2828_s15, 2  ;;  %s2005_s25 = sand.u32 1, %s2816_s12  }
 0x286   : > { %s2006_s26 = scalar_lea.sflag [#allocation4], %s2005_s25 }
 0x287   : > { %p2077_p7 = pnand %p2080_p4, %p2903_p6 }
 0x289   : > { %p2078_p8 = pneg %p2077_p7 }
 0x28b   : > { %2811 = dma.done.wait (%p2078_p8), %s2006_s26, 512  }
 0x28c   : > { %2813 = vsyncadd (%p2078_p8), %s2006_s26, 4294966784  ;;  %p13_p9 = scmp.ge.s32.totalorder %s2886_s18, 4   ;;  %s4215_s12 = smov %s2820_s13 }
 0x28d   : > { %s4216_s13 = smov %s2824_s14  ;;  %s4217_s14 = smov %s2897_s21 }
 0x28e   : > { %s4218_s15 = smov %s2886_s18  ;;  %15 = sbr.rel (!%p13_p9) target bundleno = 3 (0x3), region = 70 }
 0x293   :  { %2012 = vsyncpa [#allocation4], 1 }
 0x294   :  { %2014 = vsyncpa [#allocation4 + $0x1], 1 }

</bundles_post_ra>
